<compile_context>
chip_gen: v7x
topology: tpu7x:2x2x1
jax: 0.10.0
libtpu: 0.0.40
codegen_flags: <defaults>
</compile_context>

<pallas_src>
import functools
import math

import jax
import jax.numpy as jnp
from jax.experimental import pallas as pl
from jax.experimental.pallas import tpu as pltpu


def _round_up(x, m):
    return ((x + m - 1) // m) * m


# ---------------------------------------------------------------------------
# Fused matmul + bias + activation kernel (conv-as-matmul and fc layers).
# ---------------------------------------------------------------------------
def _matmul_bias_act_kernel(a_ref, w_ref, b_ref, o_ref, *, act, n_valid):
    acc = jnp.dot(a_ref[...], w_ref[...], preferred_element_type=jnp.float32)
    acc = acc + b_ref[...]                                # (rt, Np) + (1, Np)
    if act == "relu":
        acc = jnp.maximum(acc, 0.0)
    elif act == "log_softmax":
        # Mask out padded output columns so they do not pollute the softmax.
        col = jax.lax.broadcasted_iota(jnp.int32, acc.shape, 1)
        valid = col < n_valid
        masked = jnp.where(valid, acc, jnp.full_like(acc, -1e30))
        m = jnp.max(masked, axis=1, keepdims=True)        # stable: subtract max
        p = jnp.where(valid, jnp.exp(acc - m), jnp.zeros_like(acc))
        lse = jnp.log(jnp.sum(p, axis=1, keepdims=True)) + m
        acc = acc - lse
    o_ref[...] = acc.astype(o_ref.dtype)


def matmul_bias_act(a, w, b, *, act="none", out_dtype=jnp.bfloat16,
                    row_tile=256):
    """(M, K) @ (K, N) + b with a fused activation epilogue.

    Pads K and N to multiples of 128 (lane-dense), tiles M (parallel grid
    axis), keeps weight/bias resident in VMEM, returns the padded (Mp, Np)
    slab; callers slice back the valid region.
    """
    M, K = a.shape
    Kw, Nout = w.shape
    assert K == Kw
    Kp = _round_up(K, 128)
    Np = _round_up(Nout, 128)
    rt = min(row_tile, _round_up(M, 8))
    Mp = _round_up(M, rt)

    a_p = jnp.zeros((Mp, Kp), jnp.bfloat16).at[:M, :K].set(a.astype(jnp.bfloat16))
    w_p = jnp.zeros((Kp, Np), jnp.bfloat16).at[:K, :Nout].set(w.astype(jnp.bfloat16))
    b_p = jnp.zeros((1, Np), jnp.float32).at[0, :Nout].set(b.astype(jnp.float32))

    kernel = functools.partial(_matmul_bias_act_kernel, act=act, n_valid=Nout)
    out = pl.pallas_call(
        kernel,
        out_shape=jax.ShapeDtypeStruct((Mp, Np), out_dtype),
        grid_spec=pltpu.PrefetchScalarGridSpec(
            num_scalar_prefetch=0,
            grid=(Mp // rt,),
            in_specs=[
                pl.BlockSpec((rt, Kp), lambda i: (i, 0)),   # activations: tiled rows
                pl.BlockSpec((Kp, Np), lambda i: (0, 0)),   # weight resident in VMEM
                pl.BlockSpec((1, Np), lambda i: (0, 0)),    # bias resident in VMEM
            ],
            out_specs=pl.BlockSpec((rt, Np), lambda i: (i, 0)),
        ),
        compiler_params=pltpu.CompilerParams(
            dimension_semantics=("parallel",)),
    )(a_p, w_p, b_p)
    return out


# ---------------------------------------------------------------------------
# 2x2 max-pool (stride 2).  Window corners are leading dims -> lane-dense.
# ---------------------------------------------------------------------------
def _maxpool_kernel(x_ref, o_ref):
    a = x_ref[0, 0]            # (rt, Cp)
    b = x_ref[0, 1]
    c = x_ref[1, 0]
    d = x_ref[1, 1]
    o_ref[...] = jnp.maximum(jnp.maximum(a, b), jnp.maximum(c, d))


def maxpool2x2(y, n, h, w):
    """y: (n*h*w, Cp) lane-padded activations -> ((n*(h//2)*(w//2), Cp), (ho, wo))."""
    cp = y.shape[-1]
    ho, wo = h // 2, w // 2
    y = y.reshape(n, ho, 2, wo, 2, cp)
    y = jnp.transpose(y, (2, 4, 0, 1, 3, 5)).reshape(2, 2, n * ho * wo, cp)
    r = n * ho * wo
    rt = min(512, _round_up(r, 8))
    rp = _round_up(r, rt)
    if rp != r:
        y = jnp.pad(y, ((0, 0), (0, 0), (0, rp - r), (0, 0)))
    out = pl.pallas_call(
        _maxpool_kernel,
        out_shape=jax.ShapeDtypeStruct((rp, cp), y.dtype),
        grid_spec=pltpu.PrefetchScalarGridSpec(
            num_scalar_prefetch=0,
            grid=(rp // rt,),
            in_specs=[pl.BlockSpec((2, 2, rt, cp), lambda i: (0, 0, i, 0))],
            out_specs=pl.BlockSpec((rt, cp), lambda i: (i, 0)),
        ),
        compiler_params=pltpu.CompilerParams(
            dimension_semantics=("parallel",)),
    )(y)
    return out[:r], (ho, wo)


# ---------------------------------------------------------------------------
# Conv layer = im2col (bf16 XLA glue) + fused matmul/bias/ReLU Pallas kernel.
# ---------------------------------------------------------------------------
def conv_bias_relu(x_nhwc, w_oihw, b):
    n, h, w, c = x_nhwc.shape
    cout, cin, kh, kw = w_oihw.shape
    assert cin == c
    ho, wo = h - kh + 1, w - kw + 1
    cols = []
    for i in range(kh):
        for j in range(kw):
            cols.append(x_nhwc[:, i:i + ho, j:j + wo, :])
    patches = jnp.concatenate(cols, axis=-1).reshape(n * ho * wo, kh * kw * c)
    w_mat = jnp.transpose(w_oihw, (2, 3, 1, 0)).reshape(kh * kw * cin, cout)
    out = matmul_bias_act(patches, w_mat, b, act="relu", out_dtype=jnp.bfloat16)
    return out[:n * ho * wo], (ho, wo, cout)


# ---------------------------------------------------------------------------
# Full forward pass (matches PyTorch Net.forward semantics).
# ---------------------------------------------------------------------------
def net_forward(x, params):
    n = x.shape[0]
    h = jnp.transpose(x, (0, 2, 3, 1))                    # NCHW -> NHWC

    for wname, bname in (("w1", "b1"), ("w2", "b2"), ("w3", "b3")):
        y, (ho, wo, c) = conv_bias_relu(h, params[wname], params[bname])
        y, (ho, wo) = maxpool2x2(y, n, ho, wo)            # relu(max)==max(relu)
        h = y.reshape(n, ho, wo, -1)[..., :c]             # drop lane padding

    # Flatten in PyTorch NCHW order: x.view(-1, 80)
    flat = jnp.transpose(h, (0, 3, 1, 2)).reshape(n, c * ho * wo)

    h1 = matmul_bias_act(flat, params["fc1_w"].T, params["fc1_b"],
                         act="relu", out_dtype=jnp.bfloat16)
    h1 = h1[:n, :params["fc1_w"].shape[0]]

    out = matmul_bias_act(h1, params["fc2_w"].T, params["fc2_b"],
                          act="log_softmax", out_dtype=jnp.float32)
    return out[:n, :params["fc2_w"].shape[0]]


# ---------------------------------------------------------------------------
# Pure-JAX (f32) reference of the PyTorch module, for a sanity check.
# ---------------------------------------------------------------------------
def reference_forward(x, params):
    def conv(z, w, b):
        y = jax.lax.conv_general_dilated(
            z, w, window_strides=(1, 1), padding="VALID",
            dimension_numbers=("NCHW", "OIHW", "NCHW"))
        return y + b[None, :, None, None]

    def pool_relu(y):
        n, c, hh, ww = y.shape
        y = y.reshape(n, c, hh // 2, 2, ww // 2, 2).max(axis=(3, 5))
        return jnp.maximum(y, 0.0)

    y = pool_relu(conv(x, params["w1"], params["b1"]))
    y = pool_relu(conv(y, params["w2"], params["b2"]))
    y = pool_relu(conv(y, params["w3"], params["b3"]))
    y = y.reshape(y.shape[0], -1)
    y = jnp.maximum(y @ params["fc1_w"].T + params["fc1_b"], 0.0)
    y = y @ params["fc2_w"].T + params["fc2_b"]
    return jax.nn.log_softmax(y, axis=1)


if __name__ == "__main__":
    key = jax.random.PRNGKey(0)
    ks = jax.random.split(key, 11)

    def uinit(k, shape, fan_in):
        bound = 1.0 / math.sqrt(fan_in)
        return jax.random.uniform(k, shape, jnp.float32, -bound, bound)

    params = {
        "w1": uinit(ks[0], (10, 1, 3, 3), 1 * 3 * 3),
        "b1": uinit(ks[1], (10,), 1 * 3 * 3),
        "w2": uinit(ks[2], (20, 10, 4, 4), 10 * 4 * 4),
        "b2": uinit(ks[3], (20,), 10 * 4 * 4),
        "w3": uinit(ks[4], (20, 20, 2, 2), 20 * 2 * 2),
        "b3": uinit(ks[5], (20,), 20 * 2 * 2),
        "fc1_w": uinit(ks[6], (40, 80), 80),
        "fc1_b": uinit(ks[7], (40,), 80),
        "fc2_w": uinit(ks[8], (10, 40), 40),
        "fc2_b": uinit(ks[9], (10,), 40),
    }
    x = jax.random.normal(ks[10], (2, 1, 28, 28), jnp.float32)

    out = jax.block_until_ready(jax.jit(net_forward)(x, params))
    ref = jax.block_until_ready(jax.jit(reference_forward)(x, params))

    assert out.shape == (2, 10), out.shape
    assert bool(jnp.all(jnp.isfinite(out)))
    max_err = float(jnp.max(jnp.abs(out - ref)))
    # bf16 matmuls (f32 accumulation) vs f32 reference -> loose tolerance.
    assert max_err < 1e-1, f"mismatch vs reference: {max_err}"
    print("KERNEL_OK")
</pallas_src>

<mosaic_0001>
module attributes {stable_mosaic.version = 11 : i64} {
  func.func @_matmul_bias_act_kernel(%arg0: i32, %arg1: memref<256x128xbf16, #tpu.memory_space<vmem>>, %arg2: memref<128x128xbf16, #tpu.memory_space<vmem>>, %arg3: memref<1x128xf32, #tpu.memory_space<vmem>>, %arg4: memref<256x128xbf16, #tpu.memory_space<vmem>>) attributes {dimension_semantics = [#tpu.dimension_semantics<parallel>], iteration_bounds = array<i64: 6>, scalar_prefetch = 0 : i64, scratch_operands = 0 : i64, tpu.core_type = #tpu.core_type<tc>, window_params = [{transform_indices = @transform_0, window_bounds = array<i64: 256, 128>}, {pipeline_mode = #tpu.pipeline_mode<synchronous>, transform_indices = @transform_1, window_bounds = array<i64: 128, 128>}, {pipeline_mode = #tpu.pipeline_mode<synchronous>, transform_indices = @transform_2, window_bounds = array<i64: 1, 128>}, {transform_indices = @transform_3, window_bounds = array<i64: 256, 128>}]} {
    %c0 = arith.constant 0 : index
    %c0_0 = arith.constant 0 : index
    %0 = vector.load %arg1[%c0, %c0_0] : memref<256x128xbf16, #tpu.memory_space<vmem>>, vector<256x128xbf16>
    %c0_1 = arith.constant 0 : index
    %c0_2 = arith.constant 0 : index
    %1 = vector.load %arg2[%c0_1, %c0_2] : memref<128x128xbf16, #tpu.memory_space<vmem>>, vector<128x128xbf16>
    %cst = arith.constant dense<0.000000e+00> : vector<256x128xf32>
    %2 = tpu.matmul %0, %1, %cst {dimension_numbers = #tpu.dot_dimension_numbers<[1], [0], [0], [1], [0, 0, 1, 1], [], []>} : vector<256x128xbf16>, vector<128x128xbf16>, vector<256x128xf32> -> vector<256x128xf32>
    %c0_3 = arith.constant 0 : index
    %c0_4 = arith.constant 0 : index
    %3 = vector.load %arg3[%c0_3, %c0_4] : memref<1x128xf32, #tpu.memory_space<vmem>>, vector<1x128xf32>
    %4 = vector.broadcast %3 : vector<1x128xf32> to vector<256x128xf32>
    %5 = arith.addf %2, %4 : vector<256x128xf32>
    %cst_5 = arith.constant 0.000000e+00 : f32
    %6 = vector.broadcast %cst_5 : f32 to vector<256x128xf32>
    %7 = arith.maximumf %5, %6 : vector<256x128xf32>
    %8 = arith.truncf %7 : vector<256x128xf32> to vector<256x128xbf16>
    %c0_6 = arith.constant 0 : index
    %c0_7 = arith.constant 0 : index
    %9 = vector.load %arg4[%c0_6, %c0_7] : memref<256x128xbf16, #tpu.memory_space<vmem>>, vector<256x128xbf16>
    tpu.vector_store %arg4[%c0_6, %c0_7], %8 {strides = array<i32>} : memref<256x128xbf16, #tpu.memory_space<vmem>>, vector<256x128xbf16>,
    return
  }
  func.func @transform_0(%arg0: i32) -> (i32, i32) {
    %c0_i32 = arith.constant 0 : i32
    %c0_i32_0 = arith.constant 0 : i32
    return %arg0, %c0_i32 : i32, i32
  }
  func.func @transform_1(%arg0: i32) -> (i32, i32) {
    %c0_i32 = arith.constant 0 : i32
    %c0_i32_0 = arith.constant 0 : i32
    %c0_i32_1 = arith.constant 0 : i32
    return %c0_i32, %c0_i32_0 : i32, i32
  }
  func.func @transform_2(%arg0: i32) -> (i32, i32) {
    %c0_i32 = arith.constant 0 : i32
    %c0_i32_0 = arith.constant 0 : i32
    %c0_i32_1 = arith.constant 0 : i32
    return %c0_i32, %c0_i32_0 : i32, i32
  }
  func.func @transform_3(%arg0: i32) -> (i32, i32) {
    %c0_i32 = arith.constant 0 : i32
    %c0_i32_0 = arith.constant 0 : i32
    return %arg0, %c0_i32 : i32, i32
  }
}

module attributes {stable_mosaic.version = 11 : i64} {
  func.func @_maxpool_kernel(%arg0: i32, %arg1: memref<2x2x344x128xbf16, #tpu.memory_space<vmem>>, %arg2: memref<344x128xbf16, #tpu.memory_space<vmem>>) attributes {dimension_semantics = [#tpu.dimension_semantics<parallel>], iteration_bounds = array<i64: 1>, scalar_prefetch = 0 : i64, scratch_operands = 0 : i64, tpu.core_type = #tpu.core_type<tc>, window_params = [{transform_indices = @transform_0, window_bounds = array<i64: 2, 2, 344, 128>}, {transform_indices = @transform_1, window_bounds = array<i64: 344, 128>}]} {
    %c0 = arith.constant 0 : index
    %c0_0 = arith.constant 0 : index
    %c0_1 = arith.constant 0 : index
    %c0_2 = arith.constant 0 : index
    %0 = vector.load %arg1[%c0, %c0_0, %c0_1, %c0_2] : memref<2x2x344x128xbf16, #tpu.memory_space<vmem>>, vector<1x1x344x128xbf16>
    %1 = vector.shape_cast %0 : vector<1x1x344x128xbf16> to vector<344x128xbf16>
    %c0_3 = arith.constant 0 : index
    %c1 = arith.constant 1 : index
    %c0_4 = arith.constant 0 : index
    %c0_5 = arith.constant 0 : index
    %2 = vector.load %arg1[%c0_3, %c1, %c0_4, %c0_5] : memref<2x2x344x128xbf16, #tpu.memory_space<vmem>>, vector<1x1x344x128xbf16>
    %3 = vector.shape_cast %2 : vector<1x1x344x128xbf16> to vector<344x128xbf16>
    %c1_6 = arith.constant 1 : index
    %c0_7 = arith.constant 0 : index
    %c0_8 = arith.constant 0 : index
    %c0_9 = arith.constant 0 : index
    %4 = vector.load %arg1[%c1_6, %c0_7, %c0_8, %c0_9] : memref<2x2x344x128xbf16, #tpu.memory_space<vmem>>, vector<1x1x344x128xbf16>
    %5 = vector.shape_cast %4 : vector<1x1x344x128xbf16> to vector<344x128xbf16>
    %c1_10 = arith.constant 1 : index
    %c1_11 = arith.constant 1 : index
    %c0_12 = arith.constant 0 : index
    %c0_13 = arith.constant 0 : index
    %6 = vector.load %arg1[%c1_10, %c1_11, %c0_12, %c0_13] : memref<2x2x344x128xbf16, #tpu.memory_space<vmem>>, vector<1x1x344x128xbf16>
    %7 = vector.shape_cast %6 : vector<1x1x344x128xbf16> to vector<344x128xbf16>
    %8 = arith.maximumf %1, %3 : vector<344x128xbf16>
    %9 = arith.maximumf %5, %7 : vector<344x128xbf16>
    %10 = arith.maximumf %8, %9 : vector<344x128xbf16>
    %c0_14 = arith.constant 0 : index
    %c0_15 = arith.constant 0 : index
    %11 = vector.load %arg2[%c0_14, %c0_15] : memref<344x128xbf16, #tpu.memory_space<vmem>>, vector<344x128xbf16>
    tpu.vector_store %arg2[%c0_14, %c0_15], %10 {strides = array<i32>} : memref<344x128xbf16, #tpu.memory_space<vmem>>, vector<344x128xbf16>,
    return
  }
  func.func @transform_0(%arg0: i32) -> (i32, i32, i32, i32) {
    %c0_i32 = arith.constant 0 : i32
    %c0_i32_0 = arith.constant 0 : i32
    %c0_i32_1 = arith.constant 0 : i32
    %c0_i32_2 = arith.constant 0 : i32
    return %c0_i32, %c0_i32_0, %arg0, %c0_i32_1 : i32, i32, i32, i32
  }
  func.func @transform_1(%arg0: i32) -> (i32, i32) {
    %c0_i32 = arith.constant 0 : i32
    %c0_i32_0 = arith.constant 0 : i32
    return %arg0, %c0_i32 : i32, i32
  }
}

module attributes {stable_mosaic.version = 11 : i64} {
  func.func @_matmul_bias_act_kernel(%arg0: i32, %arg1: memref<200x256xbf16, #tpu.memory_space<vmem>>, %arg2: memref<256x128xbf16, #tpu.memory_space<vmem>>, %arg3: memref<1x128xf32, #tpu.memory_space<vmem>>, %arg4: memref<200x128xbf16, #tpu.memory_space<vmem>>) attributes {dimension_semantics = [#tpu.dimension_semantics<parallel>], iteration_bounds = array<i64: 1>, scalar_prefetch = 0 : i64, scratch_operands = 0 : i64, tpu.core_type = #tpu.core_type<tc>, window_params = [{transform_indices = @transform_0, window_bounds = array<i64: 200, 256>}, {pipeline_mode = #tpu.pipeline_mode<synchronous>, transform_indices = @transform_1, window_bounds = array<i64: 256, 128>}, {pipeline_mode = #tpu.pipeline_mode<synchronous>, transform_indices = @transform_2, window_bounds = array<i64: 1, 128>}, {transform_indices = @transform_3, window_bounds = array<i64: 200, 128>}]} {
    %c0 = arith.constant 0 : index
    %c0_0 = arith.constant 0 : index
    %0 = vector.load %arg1[%c0, %c0_0] : memref<200x256xbf16, #tpu.memory_space<vmem>>, vector<200x256xbf16>
    %c0_1 = arith.constant 0 : index
    %c0_2 = arith.constant 0 : index
    %1 = vector.load %arg2[%c0_1, %c0_2] : memref<256x128xbf16, #tpu.memory_space<vmem>>, vector<256x128xbf16>
    %cst = arith.constant dense<0.000000e+00> : vector<200x128xf32>
    %2 = tpu.matmul %0, %1, %cst {dimension_numbers = #tpu.dot_dimension_numbers<[1], [0], [0], [1], [0, 0, 1, 1], [], []>} : vector<200x256xbf16>, vector<256x128xbf16>, vector<200x128xf32> -> vector<200x128xf32>
    %c0_3 = arith.constant 0 : index
    %c0_4 = arith.constant 0 : index
    %3 = vector.load %arg3[%c0_3, %c0_4] : memref<1x128xf32, #tpu.memory_space<vmem>>, vector<1x128xf32>
    %4 = vector.broadcast %3 : vector<1x128xf32> to vector<200x128xf32>
    %5 = arith.addf %2, %4 : vector<200x128xf32>
    %cst_5 = arith.constant 0.000000e+00 : f32
    %6 = vector.broadcast %cst_5 : f32 to vector<200x128xf32>
    %7 = arith.maximumf %5, %6 : vector<200x128xf32>
    %8 = arith.truncf %7 : vector<200x128xf32> to vector<200x128xbf16>
    %c0_6 = arith.constant 0 : index
    %c0_7 = arith.constant 0 : index
    %9 = vector.load %arg4[%c0_6, %c0_7] : memref<200x128xbf16, #tpu.memory_space<vmem>>, vector<200x128xbf16>
    tpu.vector_store %arg4[%c0_6, %c0_7], %8 {strides = array<i32>} : memref<200x128xbf16, #tpu.memory_space<vmem>>, vector<200x128xbf16>,
    return
  }
  func.func @transform_0(%arg0: i32) -> (i32, i32) {
    %c0_i32 = arith.constant 0 : i32
    %c0_i32_0 = arith.constant 0 : i32
    return %arg0, %c0_i32 : i32, i32
  }
  func.func @transform_1(%arg0: i32) -> (i32, i32) {
    %c0_i32 = arith.constant 0 : i32
    %c0_i32_0 = arith.constant 0 : i32
    %c0_i32_1 = arith.constant 0 : i32
    return %c0_i32, %c0_i32_0 : i32, i32
  }
  func.func @transform_2(%arg0: i32) -> (i32, i32) {
    %c0_i32 = arith.constant 0 : i32
    %c0_i32_0 = arith.constant 0 : i32
    %c0_i32_1 = arith.constant 0 : i32
    return %c0_i32, %c0_i32_0 : i32, i32
  }
  func.func @transform_3(%arg0: i32) -> (i32, i32) {
    %c0_i32 = arith.constant 0 : i32
    %c0_i32_0 = arith.constant 0 : i32
    return %arg0, %c0_i32 : i32, i32
  }
}

module attributes {stable_mosaic.version = 11 : i64} {
  func.func @_maxpool_kernel(%arg0: i32, %arg1: memref<2x2x56x128xbf16, #tpu.memory_space<vmem>>, %arg2: memref<56x128xbf16, #tpu.memory_space<vmem>>) attributes {dimension_semantics = [#tpu.dimension_semantics<parallel>], iteration_bounds = array<i64: 1>, scalar_prefetch = 0 : i64, scratch_operands = 0 : i64, tpu.core_type = #tpu.core_type<tc>, window_params = [{transform_indices = @transform_0, window_bounds = array<i64: 2, 2, 56, 128>}, {transform_indices = @transform_1, window_bounds = array<i64: 56, 128>}]} {
    %c0 = arith.constant 0 : index
    %c0_0 = arith.constant 0 : index
    %c0_1 = arith.constant 0 : index
    %c0_2 = arith.constant 0 : index
    %0 = vector.load %arg1[%c0, %c0_0, %c0_1, %c0_2] : memref<2x2x56x128xbf16, #tpu.memory_space<vmem>>, vector<1x1x56x128xbf16>
    %1 = vector.shape_cast %0 : vector<1x1x56x128xbf16> to vector<56x128xbf16>
    %c0_3 = arith.constant 0 : index
    %c1 = arith.constant 1 : index
    %c0_4 = arith.constant 0 : index
    %c0_5 = arith.constant 0 : index
    %2 = vector.load %arg1[%c0_3, %c1, %c0_4, %c0_5] : memref<2x2x56x128xbf16, #tpu.memory_space<vmem>>, vector<1x1x56x128xbf16>
    %3 = vector.shape_cast %2 : vector<1x1x56x128xbf16> to vector<56x128xbf16>
    %c1_6 = arith.constant 1 : index
    %c0_7 = arith.constant 0 : index
    %c0_8 = arith.constant 0 : index
    %c0_9 = arith.constant 0 : index
    %4 = vector.load %arg1[%c1_6, %c0_7, %c0_8, %c0_9] : memref<2x2x56x128xbf16, #tpu.memory_space<vmem>>, vector<1x1x56x128xbf16>
    %5 = vector.shape_cast %4 : vector<1x1x56x128xbf16> to vector<56x128xbf16>
    %c1_10 = arith.constant 1 : index
    %c1_11 = arith.constant 1 : index
    %c0_12 = arith.constant 0 : index
    %c0_13 = arith.constant 0 : index
    %6 = vector.load %arg1[%c1_10, %c1_11, %c0_12, %c0_13] : memref<2x2x56x128xbf16, #tpu.memory_space<vmem>>, vector<1x1x56x128xbf16>
    %7 = vector.shape_cast %6 : vector<1x1x56x128xbf16> to vector<56x128xbf16>
    %8 = arith.maximumf %1, %3 : vector<56x128xbf16>
    %9 = arith.maximumf %5, %7 : vector<56x128xbf16>
    %10 = arith.maximumf %8, %9 : vector<56x128xbf16>
    %c0_14 = arith.constant 0 : index
    %c0_15 = arith.constant 0 : index
    %11 = vector.load %arg2[%c0_14, %c0_15] : memref<56x128xbf16, #tpu.memory_space<vmem>>, vector<56x128xbf16>
    tpu.vector_store %arg2[%c0_14, %c0_15], %10 {strides = array<i32>} : memref<56x128xbf16, #tpu.memory_space<vmem>>, vector<56x128xbf16>,
    return
  }
  func.func @transform_0(%arg0: i32) -> (i32, i32, i32, i32) {
    %c0_i32 = arith.constant 0 : i32
    %c0_i32_0 = arith.constant 0 : i32
    %c0_i32_1 = arith.constant 0 : i32
    %c0_i32_2 = arith.constant 0 : i32
    return %c0_i32, %c0_i32_0, %arg0, %c0_i32_1 : i32, i32, i32, i32
  }
  func.func @transform_1(%arg0: i32) -> (i32, i32) {
    %c0_i32 = arith.constant 0 : i32
    %c0_i32_0 = arith.constant 0 : i32
    return %arg0, %c0_i32 : i32, i32
  }
}

module attributes {stable_mosaic.version = 11 : i64} {
  func.func @_matmul_bias_act_kernel(%arg0: i32, %arg1: memref<32x128xbf16, #tpu.memory_space<vmem>>, %arg2: memref<128x128xbf16, #tpu.memory_space<vmem>>, %arg3: memref<1x128xf32, #tpu.memory_space<vmem>>, %arg4: memref<32x128xbf16, #tpu.memory_space<vmem>>) attributes {dimension_semantics = [#tpu.dimension_semantics<parallel>], iteration_bounds = array<i64: 1>, scalar_prefetch = 0 : i64, scratch_operands = 0 : i64, tpu.core_type = #tpu.core_type<tc>, window_params = [{transform_indices = @transform_0, window_bounds = array<i64: 32, 128>}, {pipeline_mode = #tpu.pipeline_mode<synchronous>, transform_indices = @transform_1, window_bounds = array<i64: 128, 128>}, {pipeline_mode = #tpu.pipeline_mode<synchronous>, transform_indices = @transform_2, window_bounds = array<i64: 1, 128>}, {transform_indices = @transform_3, window_bounds = array<i64: 32, 128>}]} {
    %c0 = arith.constant 0 : index
    %c0_0 = arith.constant 0 : index
    %0 = vector.load %arg1[%c0, %c0_0] : memref<32x128xbf16, #tpu.memory_space<vmem>>, vector<32x128xbf16>
    %c0_1 = arith.constant 0 : index
    %c0_2 = arith.constant 0 : index
    %1 = vector.load %arg2[%c0_1, %c0_2] : memref<128x128xbf16, #tpu.memory_space<vmem>>, vector<128x128xbf16>
    %cst = arith.constant dense<0.000000e+00> : vector<32x128xf32>
    %2 = tpu.matmul %0, %1, %cst {dimension_numbers = #tpu.dot_dimension_numbers<[1], [0], [0], [1], [0, 0, 1, 1], [], []>} : vector<32x128xbf16>, vector<128x128xbf16>, vector<32x128xf32> -> vector<32x128xf32>
    %c0_3 = arith.constant 0 : index
    %c0_4 = arith.constant 0 : index
    %3 = vector.load %arg3[%c0_3, %c0_4] : memref<1x128xf32, #tpu.memory_space<vmem>>, vector<1x128xf32>
    %4 = vector.broadcast %3 : vector<1x128xf32> to vector<32x128xf32>
    %5 = arith.addf %2, %4 : vector<32x128xf32>
    %cst_5 = arith.constant 0.000000e+00 : f32
    %6 = vector.broadcast %cst_5 : f32 to vector<32x128xf32>
    %7 = arith.maximumf %5, %6 : vector<32x128xf32>
    %8 = arith.truncf %7 : vector<32x128xf32> to vector<32x128xbf16>
    %c0_6 = arith.constant 0 : index
    %c0_7 = arith.constant 0 : index
    %9 = vector.load %arg4[%c0_6, %c0_7] : memref<32x128xbf16, #tpu.memory_space<vmem>>, vector<32x128xbf16>
    tpu.vector_store %arg4[%c0_6, %c0_7], %8 {strides = array<i32>} : memref<32x128xbf16, #tpu.memory_space<vmem>>, vector<32x128xbf16>,
    return
  }
  func.func @transform_0(%arg0: i32) -> (i32, i32) {
    %c0_i32 = arith.constant 0 : i32
    %c0_i32_0 = arith.constant 0 : i32
    return %arg0, %c0_i32 : i32, i32
  }
  func.func @transform_1(%arg0: i32) -> (i32, i32) {
    %c0_i32 = arith.constant 0 : i32
    %c0_i32_0 = arith.constant 0 : i32
    %c0_i32_1 = arith.constant 0 : i32
    return %c0_i32, %c0_i32_0 : i32, i32
  }
  func.func @transform_2(%arg0: i32) -> (i32, i32) {
    %c0_i32 = arith.constant 0 : i32
    %c0_i32_0 = arith.constant 0 : i32
    %c0_i32_1 = arith.constant 0 : i32
    return %c0_i32, %c0_i32_0 : i32, i32
  }
  func.func @transform_3(%arg0: i32) -> (i32, i32) {
    %c0_i32 = arith.constant 0 : i32
    %c0_i32_0 = arith.constant 0 : i32
    return %arg0, %c0_i32 : i32, i32
  }
}

module attributes {stable_mosaic.version = 11 : i64} {
  func.func @_maxpool_kernel(%arg0: i32, %arg1: memref<2x2x8x128xbf16, #tpu.memory_space<vmem>>, %arg2: memref<8x128xbf16, #tpu.memory_space<vmem>>) attributes {dimension_semantics = [#tpu.dimension_semantics<parallel>], iteration_bounds = array<i64: 1>, scalar_prefetch = 0 : i64, scratch_operands = 0 : i64, tpu.core_type = #tpu.core_type<tc>, window_params = [{transform_indices = @transform_0, window_bounds = array<i64: 2, 2, 8, 128>}, {transform_indices = @transform_1, window_bounds = array<i64: 8, 128>}]} {
    %c0 = arith.constant 0 : index
    %c0_0 = arith.constant 0 : index
    %c0_1 = arith.constant 0 : index
    %c0_2 = arith.constant 0 : index
    %0 = vector.load %arg1[%c0, %c0_0, %c0_1, %c0_2] : memref<2x2x8x128xbf16, #tpu.memory_space<vmem>>, vector<1x1x8x128xbf16>
    %1 = vector.shape_cast %0 : vector<1x1x8x128xbf16> to vector<8x128xbf16>
    %c0_3 = arith.constant 0 : index
    %c1 = arith.constant 1 : index
    %c0_4 = arith.constant 0 : index
    %c0_5 = arith.constant 0 : index
    %2 = vector.load %arg1[%c0_3, %c1, %c0_4, %c0_5] : memref<2x2x8x128xbf16, #tpu.memory_space<vmem>>, vector<1x1x8x128xbf16>
    %3 = vector.shape_cast %2 : vector<1x1x8x128xbf16> to vector<8x128xbf16>
    %c1_6 = arith.constant 1 : index
    %c0_7 = arith.constant 0 : index
    %c0_8 = arith.constant 0 : index
    %c0_9 = arith.constant 0 : index
    %4 = vector.load %arg1[%c1_6, %c0_7, %c0_8, %c0_9] : memref<2x2x8x128xbf16, #tpu.memory_space<vmem>>, vector<1x1x8x128xbf16>
    %5 = vector.shape_cast %4 : vector<1x1x8x128xbf16> to vector<8x128xbf16>
    %c1_10 = arith.constant 1 : index
    %c1_11 = arith.constant 1 : index
    %c0_12 = arith.constant 0 : index
    %c0_13 = arith.constant 0 : index
    %6 = vector.load %arg1[%c1_10, %c1_11, %c0_12, %c0_13] : memref<2x2x8x128xbf16, #tpu.memory_space<vmem>>, vector<1x1x8x128xbf16>
    %7 = vector.shape_cast %6 : vector<1x1x8x128xbf16> to vector<8x128xbf16>
    %8 = arith.maximumf %1, %3 : vector<8x128xbf16>
    %9 = arith.maximumf %5, %7 : vector<8x128xbf16>
    %10 = arith.maximumf %8, %9 : vector<8x128xbf16>
    %c0_14 = arith.constant 0 : index
    %c0_15 = arith.constant 0 : index
    %11 = vector.load %arg2[%c0_14, %c0_15] : memref<8x128xbf16, #tpu.memory_space<vmem>>, vector<8x128xbf16>
    tpu.vector_store %arg2[%c0_14, %c0_15], %10 {strides = array<i32>} : memref<8x128xbf16, #tpu.memory_space<vmem>>, vector<8x128xbf16>,
    return
  }
  func.func @transform_0(%arg0: i32) -> (i32, i32, i32, i32) {
    %c0_i32 = arith.constant 0 : i32
    %c0_i32_0 = arith.constant 0 : i32
    %c0_i32_1 = arith.constant 0 : i32
    %c0_i32_2 = arith.constant 0 : i32
    return %c0_i32, %c0_i32_0, %arg0, %c0_i32_1 : i32, i32, i32, i32
  }
  func.func @transform_1(%arg0: i32) -> (i32, i32) {
    %c0_i32 = arith.constant 0 : i32
    %c0_i32_0 = arith.constant 0 : i32
    return %arg0, %c0_i32 : i32, i32
  }
}

module attributes {stable_mosaic.version = 11 : i64} {
  func.func @_matmul_bias_act_kernel(%arg0: i32, %arg1: memref<8x128xbf16, #tpu.memory_space<vmem>>, %arg2: memref<128x128xbf16, #tpu.memory_space<vmem>>, %arg3: memref<1x128xf32, #tpu.memory_space<vmem>>, %arg4: memref<8x128xbf16, #tpu.memory_space<vmem>>) attributes {dimension_semantics = [#tpu.dimension_semantics<parallel>], iteration_bounds = array<i64: 1>, scalar_prefetch = 0 : i64, scratch_operands = 0 : i64, tpu.core_type = #tpu.core_type<tc>, window_params = [{transform_indices = @transform_0, window_bounds = array<i64: 8, 128>}, {pipeline_mode = #tpu.pipeline_mode<synchronous>, transform_indices = @transform_1, window_bounds = array<i64: 128, 128>}, {pipeline_mode = #tpu.pipeline_mode<synchronous>, transform_indices = @transform_2, window_bounds = array<i64: 1, 128>}, {transform_indices = @transform_3, window_bounds = array<i64: 8, 128>}]} {
    %c0 = arith.constant 0 : index
    %c0_0 = arith.constant 0 : index
    %0 = vector.load %arg1[%c0, %c0_0] : memref<8x128xbf16, #tpu.memory_space<vmem>>, vector<8x128xbf16>
    %c0_1 = arith.constant 0 : index
    %c0_2 = arith.constant 0 : index
    %1 = vector.load %arg2[%c0_1, %c0_2] : memref<128x128xbf16, #tpu.memory_space<vmem>>, vector<128x128xbf16>
    %cst = arith.constant dense<0.000000e+00> : vector<8x128xf32>
    %2 = tpu.matmul %0, %1, %cst {dimension_numbers = #tpu.dot_dimension_numbers<[1], [0], [0], [1], [0, 0, 1, 1], [], []>} : vector<8x128xbf16>, vector<128x128xbf16>, vector<8x128xf32> -> vector<8x128xf32>
    %c0_3 = arith.constant 0 : index
    %c0_4 = arith.constant 0 : index
    %3 = vector.load %arg3[%c0_3, %c0_4] : memref<1x128xf32, #tpu.memory_space<vmem>>, vector<1x128xf32>
    %4 = vector.broadcast %3 : vector<1x128xf32> to vector<8x128xf32>
    %5 = arith.addf %2, %4 : vector<8x128xf32>
    %cst_5 = arith.constant 0.000000e+00 : f32
    %6 = vector.broadcast %cst_5 : f32 to vector<8x128xf32>
    %7 = arith.maximumf %5, %6 : vector<8x128xf32>
    %8 = arith.truncf %7 : vector<8x128xf32> to vector<8x128xbf16>
    %c0_6 = arith.constant 0 : index
    %c0_7 = arith.constant 0 : index
    %9 = vector.load %arg4[%c0_6, %c0_7] : memref<8x128xbf16, #tpu.memory_space<vmem>>, vector<8x128xbf16>
    tpu.vector_store %arg4[%c0_6, %c0_7], %8 {strides = array<i32>} : memref<8x128xbf16, #tpu.memory_space<vmem>>, vector<8x128xbf16>,
    return
  }
  func.func @transform_0(%arg0: i32) -> (i32, i32) {
    %c0_i32 = arith.constant 0 : i32
    %c0_i32_0 = arith.constant 0 : i32
    return %arg0, %c0_i32 : i32, i32
  }
  func.func @transform_1(%arg0: i32) -> (i32, i32) {
    %c0_i32 = arith.constant 0 : i32
    %c0_i32_0 = arith.constant 0 : i32
    %c0_i32_1 = arith.constant 0 : i32
    return %c0_i32, %c0_i32_0 : i32, i32
  }
  func.func @transform_2(%arg0: i32) -> (i32, i32) {
    %c0_i32 = arith.constant 0 : i32
    %c0_i32_0 = arith.constant 0 : i32
    %c0_i32_1 = arith.constant 0 : i32
    return %c0_i32, %c0_i32_0 : i32, i32
  }
  func.func @transform_3(%arg0: i32) -> (i32, i32) {
    %c0_i32 = arith.constant 0 : i32
    %c0_i32_0 = arith.constant 0 : i32
    return %arg0, %c0_i32 : i32, i32
  }
}

module attributes {stable_mosaic.version = 11 : i64} {
  func.func @_matmul_bias_act_kernel(%arg0: i32, %arg1: memref<8x128xbf16, #tpu.memory_space<vmem>>, %arg2: memref<128x128xbf16, #tpu.memory_space<vmem>>, %arg3: memref<1x128xf32, #tpu.memory_space<vmem>>, %arg4: memref<8x128xf32, #tpu.memory_space<vmem>>) attributes {dimension_semantics = [#tpu.dimension_semantics<parallel>], iteration_bounds = array<i64: 1>, scalar_prefetch = 0 : i64, scratch_operands = 0 : i64, tpu.core_type = #tpu.core_type<tc>, window_params = [{transform_indices = @transform_0, window_bounds = array<i64: 8, 128>}, {pipeline_mode = #tpu.pipeline_mode<synchronous>, transform_indices = @transform_1, window_bounds = array<i64: 128, 128>}, {pipeline_mode = #tpu.pipeline_mode<synchronous>, transform_indices = @transform_2, window_bounds = array<i64: 1, 128>}, {transform_indices = @transform_3, window_bounds = array<i64: 8, 128>}]} {
    %c0 = arith.constant 0 : index
    %c0_0 = arith.constant 0 : index
    %0 = vector.load %arg1[%c0, %c0_0] : memref<8x128xbf16, #tpu.memory_space<vmem>>, vector<8x128xbf16>
    %c0_1 = arith.constant 0 : index
    %c0_2 = arith.constant 0 : index
    %1 = vector.load %arg2[%c0_1, %c0_2] : memref<128x128xbf16, #tpu.memory_space<vmem>>, vector<128x128xbf16>
    %cst = arith.constant dense<0.000000e+00> : vector<8x128xf32>
    %2 = tpu.matmul %0, %1, %cst {dimension_numbers = #tpu.dot_dimension_numbers<[1], [0], [0], [1], [0, 0, 1, 1], [], []>} : vector<8x128xbf16>, vector<128x128xbf16>, vector<8x128xf32> -> vector<8x128xf32>
    %c0_3 = arith.constant 0 : index
    %c0_4 = arith.constant 0 : index
    %3 = vector.load %arg3[%c0_3, %c0_4] : memref<1x128xf32, #tpu.memory_space<vmem>>, vector<1x128xf32>
    %4 = vector.broadcast %3 : vector<1x128xf32> to vector<8x128xf32>
    %5 = arith.addf %2, %4 : vector<8x128xf32>
    %6 = tpu.iota {dimensions = array<i32: 1>} : vector<8x128xi32>
    %c10_i32 = arith.constant 10 : i32
    %7 = vector.broadcast %c10_i32 : i32 to vector<8x128xi32>
    %8 = arith.cmpi slt, %6, %7 : vector<8x128xi32>
    %cst_5 = arith.constant -1.000000e+30 : f32
    %9 = vector.broadcast %cst_5 : f32 to vector<8x128xf32>
    %10 = arith.select %8, %5, %9 : vector<8x128xi1>, vector<8x128xf32>
    %cst_6 = arith.constant dense<0xFF800000> : vector<8xf32>
    %11 = vector.multi_reduction <maximumf>, %10, %cst_6 [1] : vector<8x128xf32> to vector<8xf32>
    %12 = vector.shape_cast %11 : vector<8xf32> to vector<8x1xf32>
    %13 = vector.broadcast %12 : vector<8x1xf32> to vector<8x128xf32>
    %14 = arith.subf %5, %13 : vector<8x128xf32>
    %15 = math.exp %14 : vector<8x128xf32>
    %cst_7 = arith.constant 0.000000e+00 : f32
    %16 = vector.broadcast %cst_7 : f32 to vector<8x128xf32>
    %17 = arith.select %8, %15, %16 : vector<8x128xi1>, vector<8x128xf32>
    %cst_8 = arith.constant dense<0.000000e+00> : vector<8xf32>
    %18 = vector.multi_reduction <add>, %17, %cst_8 [1] : vector<8x128xf32> to vector<8xf32>
    %19 = vector.shape_cast %18 : vector<8xf32> to vector<8x1xf32>
    %20 = math.log %19 : vector<8x1xf32>
    %21 = arith.addf %20, %12 : vector<8x1xf32>
    %22 = vector.broadcast %21 : vector<8x1xf32> to vector<8x128xf32>
    %23 = arith.subf %5, %22 : vector<8x128xf32>
    %c0_9 = arith.constant 0 : index
    %c0_10 = arith.constant 0 : index
    %24 = vector.load %arg4[%c0_9, %c0_10] : memref<8x128xf32, #tpu.memory_space<vmem>>, vector<8x128xf32>
    tpu.vector_store %arg4[%c0_9, %c0_10], %23 {strides = array<i32>} : memref<8x128xf32, #tpu.memory_space<vmem>>, vector<8x128xf32>,
    return
  }
  func.func @transform_0(%arg0: i32) -> (i32, i32) {
    %c0_i32 = arith.constant 0 : i32
    %c0_i32_0 = arith.constant 0 : i32
    return %arg0, %c0_i32 : i32, i32
  }
  func.func @transform_1(%arg0: i32) -> (i32, i32) {
    %c0_i32 = arith.constant 0 : i32
    %c0_i32_0 = arith.constant 0 : i32
    %c0_i32_1 = arith.constant 0 : i32
    return %c0_i32, %c0_i32_0 : i32, i32
  }
  func.func @transform_2(%arg0: i32) -> (i32, i32) {
    %c0_i32 = arith.constant 0 : i32
    %c0_i32_0 = arith.constant 0 : i32
    %c0_i32_1 = arith.constant 0 : i32
    return %c0_i32, %c0_i32_0 : i32, i32
  }
  func.func @transform_3(%arg0: i32) -> (i32, i32) {
    %c0_i32 = arith.constant 0 : i32
    %c0_i32_0 = arith.constant 0 : i32
    return %arg0, %c0_i32 : i32, i32
  }
}

</mosaic_0001>

<bundles_post_ra>
// kernel: net_forward.8
= control target key start
LH: loop header
LB: loop body
LE: loop exit
PB: predicated region body
PF: predicated region fallthrough
CT: control target
= control target key end

     0   :  { %s1126_s12 = smov 0   ;;  %s1247_s0 = inlined_call_operand.vmem [shape: bf16[1536,128], index: 0, kind: input, shape index: {}]   ;;  %s1248_s1 = inlined_call_operand.vmem [shape: bf16[128,128], index: 1, kind: input, shape index: {}]   ;;  %s1249_s2 = inlined_call_operand.vmem [shape: f32[1,128], index: 2, kind: input, shape index: {}]   ;;  %s1250_s3 = inlined_call_operand.vmem [shape: bf16[1536,128], index: 3, kind: output, shape index: {}]  }
   0x1 LB: > { %s783_s13 = sadd.s32 4294967295, %s1104_s12   ;;  %p787_p0 = scmp.ge.s32.totalorder %s1104_s12, 1  ;;  %s1104_s12 = sphi %s1126_s12, %s13_s12  }
   0x2   : > { %p138_p1 = scmp.lt.s32.totalorder %s1104_s12, 7 }
   0x4   : > { %p139_p2 = pnand %p787_p0, %p138_p1 }
   0x5   : > { %v1074_v0 = vld [vmem:[%s1248_s1] sm:$0xff] (!%p139_p2)   ;;  %s788_s16 = sshll.u32 (!%p139_p2), %s783_s13, 5  ;;  %v1075_v1 = vld [vmem:[%s1248_s1 + $0x8] sm:$0xff] (!%p139_p2)   ;;  %v1076_v2 = vld [vmem:[%s1248_s1 + $0x10] sm:$0xff] (!%p139_p2)  }
   0x6   : > { %142 = sbr.rel (%p139_p2) target bundleno = 284 (0x11c), region = 32  ;;  %p163_p3 = scmp.lt.s32.totalorder (!%p139_p2), %s788_s16, 191  ;;  %1002 = vmatprep.subr.bf16.mxu0 (!%p139_p2), %v1074_v0  ;;  %1050 = vmatprep.subr.bf16.mxu1 (!%p139_p2), %v1074_v0  ;;  %v1077_v3 = vld [vmem:[%s1248_s1 + $0x18] sm:$0xff] (!%p139_p2)   ;;  %v1078_v6 = vld [vmem:[%s1248_s1 + $0x20] sm:$0xff] (!%p139_p2)   ;;  %v1079_v7 = vld [vmem:[%s1248_s1 + $0x28] sm:$0xff] (!%p139_p2)  }
   0x7   : > { %1003 = vmatpush3.bf16.msra.mxu0 (!%p139_p2), %v1074_v0  ;;  %1058 = vmatpush3.bf16.msra.mxu1 (!%p139_p2), %v1074_v0  ;;  %v1080_v8 = vld [vmem:[%s1248_s1 + $0x30] sm:$0xff] (!%p139_p2)   ;;  %v1081_v9 = vld [vmem:[%s1248_s1 + $0x38] sm:$0xff] (!%p139_p2)   ;;  %v1187_v24 = vld [vmem:[%s1249_s2] ss:$0 sm:$0xff] (!%p139_p2) }
   0x8   : > { %1004 = vmatprep.subr.bf16.mxu0 (!%p139_p2), %v1075_v1  ;;  %1051 = vmatprep.subr.bf16.mxu1 (!%p139_p2), %v1075_v1 }
   0xb   : > { %1005 = vmatpush3.bf16.msra.mxu0 (!%p139_p2), %v1075_v1  ;;  %1059 = vmatpush3.bf16.msra.mxu1 (!%p139_p2), %v1075_v1 }
   0xc   : > { %1006 = vmatprep.subr.bf16.mxu0 (!%p139_p2), %v1076_v2  ;;  %1052 = vmatprep.subr.bf16.mxu1 (!%p139_p2), %v1076_v2 }
   0xd   : > { %s1252_s16 = smov (!%p163_p3, %s788_s16), 191 }
   0xe   : > { %s789_s21 = sshll.u32 %s1252_s16, 2 }
   0xf   : > { %s1151_s24 = scalar_lea.vmem %s1247_s0, %s789_s21  ;;  %1007 = vmatpush3.bf16.msra.mxu0 %v1076_v2  ;;  %1060 = vmatpush3.bf16.msra.mxu1 %v1076_v2  ;;  %s1202_s13 = scalar_lea.vmem %s1250_s3, %s789_s21 }
  0x10   : > { %v1082_v4 = vld [vmem:[%s1151_s24] sm:$0xff]   ;;  %1008 = vmatprep.subr.bf16.mxu0 %v1077_v3  ;;  %1053 = vmatprep.subr.bf16.mxu1 %v1077_v3  ;;  %v1084_v10 = vld [vmem:[%s1151_s24 + $0x8] sm:$0xff]   ;;  %v1086_v12 = vld [vmem:[%s1151_s24 + $0x10] sm:$0xff]  }
  0x11   : > { %v1083_v5 = vld [vmem:[%s1151_s24 + $0x40] sm:$0xff]   ;;  %1018 = vmatprep.mubr.bf16.mxu0 %v1082_v4  ;;  %v1085_v11 = vld [vmem:[%s1151_s24 + $0x48] sm:$0xff]   ;;  %v1087_v13 = vld [vmem:[%s1151_s24 + $0x50] sm:$0xff]  }
  0x12   : > { %1034 = vmatprep.mubr.bf16.mxu1 %v1083_v5  ;;  %v1088_v14 = vld [vmem:[%s1151_s24 + $0x18] sm:$0xff]   ;;  %v1090_v16 = vld [vmem:[%s1151_s24 + $0x20] sm:$0xff]   ;;  %v1092_v18 = vld [vmem:[%s1151_s24 + $0x28] sm:$0xff]  }
  0x13   : > { %1009 = vmatpush3.bf16.msra.mxu0 %v1077_v3  ;;  %1061 = vmatpush3.bf16.msra.mxu1 %v1077_v3  ;;  %v1089_v15 = vld [vmem:[%s1151_s24 + $0x58] sm:$0xff]   ;;  %v1091_v17 = vld [vmem:[%s1151_s24 + $0x60] sm:$0xff]   ;;  %v1093_v19 = vld [vmem:[%s1151_s24 + $0x68] sm:$0xff]  }
  0x14   : > { %1010 = vmatprep.subr.bf16.mxu0 %v1078_v6  ;;  %1054 = vmatprep.subr.bf16.mxu1 %v1078_v6  ;;  %v1094_v20 = vld [vmem:[%s1151_s24 + $0x30] sm:$0xff]   ;;  %v1096_v22 = vld [vmem:[%s1151_s24 + $0x38] sm:$0xff]  }
  0x15   : > { %v1095_v21 = vld [vmem:[%s1151_s24 + $0x70] sm:$0xff]   ;;  %v1097_v23 = vld [vmem:[%s1151_s24 + $0x78] sm:$0xff]  }
  0x17   : > { %1011 = vmatpush3.bf16.msra.mxu0 %v1078_v6  ;;  %1062 = vmatpush3.bf16.msra.mxu1 %v1078_v6 }
  0x18   : > { %1012 = vmatprep.subr.bf16.mxu0 %v1079_v7  ;;  %1055 = vmatprep.subr.bf16.mxu1 %v1079_v7 }
  0x1b   : > { %1013 = vmatpush3.bf16.msra.mxu0 %v1079_v7  ;;  %1063 = vmatpush3.bf16.msra.mxu1 %v1079_v7 }
  0x1c   : > { %1014 = vmatprep.subr.bf16.mxu0 %v1080_v8  ;;  %1056 = vmatprep.subr.bf16.mxu1 %v1080_v8 }
  0x1f   : > { %1015 = vmatpush3.bf16.msra.mxu0 %v1080_v8  ;;  %1064 = vmatpush3.bf16.msra.mxu1 %v1080_v8 }
  0x20   : > { %1016 = vmatprep.subr.bf16.mxu0 %v1081_v9  ;;  %1057 = vmatprep.subr.bf16.mxu1 %v1081_v9 }
  0x23   : > { %1017 = vmatpush3.bf16.msra.mxu0 %v1081_v9  ;;  %1065 = vmatpush3.bf16.msra.mxu1 %v1081_v9 }
  0x26   : > { %1019 = vmatmul.mubr.bf16.vlgmr.msra.gmra.mrb[0].mxu0 %v1084_v10  ;;  %1035 = vmatmul.mubr.bf16.vlgmr.msra.gmra.mrb[0].mxu1 %v1085_v11 }
  0x27   : > { %1022 = vmatprep.mubr.bf16.mxu0 %v1086_v12  ;;  %1038 = vmatprep.mubr.bf16.mxu1 %v1087_v13 }
  0x2e   : > { %1023 = vmatmul.mubr.bf16.gmra.mrb[4].mxu0 %v1088_v14  ;;  %1039 = vmatmul.mubr.bf16.gmra.mrb[4].mxu1 %v1089_v15 }
  0x2f   : > { %1026 = vmatprep.mubr.bf16.mxu0 %v1090_v16  ;;  %1042 = vmatprep.mubr.bf16.mxu1 %v1091_v17 }
  0x36   : > { %1027 = vmatmul.mubr.bf16.gmra.mrb[8].mxu0 %v1092_v18  ;;  %1043 = vmatmul.mubr.bf16.gmra.mrb[8].mxu1 %v1093_v19 }
  0x37   : > { %1030 = vmatprep.mubr.bf16.mxu0 %v1094_v20  ;;  %1046 = vmatprep.mubr.bf16.mxu1 %v1095_v21 }
  0x3e   : > { %1031 = vmatmul.mubr.bf16.gmra.mrb[12].mxu0 %v1096_v22  ;;  %1047 = vmatmul.mubr.bf16.gmra.mrb[12].mxu1 %v1097_v23 }
  0xf9   : > { %v1020_v25 = vpop.f32.mrb[0].mxu0  ;;  %v1036_v26 = vpop.f32.mrb[0].mxu1 }
  0xfa   : > { %v417_v27 = vadd.f32 %v1020_v25, %v1187_v24  ;;  %v481_v28 = vadd.f32 %v1036_v26, %v1187_v24  ;;  %v408_v29 = vpop.f32.mrb[1].mxu0  ;;  %v472_v30 = vpop.f32.mrb[1].mxu1 }
  0xfb   : > { %v409_v31 = vadd.f32 %v1187_v24, %v408_v29  ;;  %v473_v32 = vadd.f32 %v1187_v24, %v472_v30  ;;  %v1021_v33 = vpop.f32.mrb[2].mxu0  ;;  %v1037_v34 = vpop.f32.mrb[2].mxu1 }
  0xfc   : > { %v420_v35 = vadd.f32 %v1021_v33, %v1187_v24  ;;  %v484_v36 = vadd.f32 %v1037_v34, %v1187_v24  ;;  %v411_v37 = vpop.f32.mrb[3].mxu0  ;;  %v475_v38 = vpop.f32.mrb[3].mxu1  ;;  %v537_v41 = vmax.f32 %v417_v27, 0.0  ;;  %v553_v42 = vmax.f32 %v481_v28, 0.0 }
  0xfd   : > { %v412_v39 = vadd.f32 %v1187_v24, %v411_v37  ;;  %v476_v40 = vadd.f32 %v1187_v24, %v475_v38  ;;  %v535_v45 = vmax.f32 %v409_v31, 0.0  ;;  %v551_v46 = vmax.f32 %v473_v32, 0.0 }
  0xfe   : > { %v538_v43 = vmax.f32 %v420_v35, 0.0  ;;  %v554_v44 = vmax.f32 %v484_v36, 0.0 }
  0xff   : > { %v536_v47 = vmax.f32 %v412_v39, 0.0  ;;  %v552_v48 = vmax.f32 %v476_v40, 0.0 }
 0x100   : > { %v891_v49 = vpack.c.bf16 %v538_v43, %v537_v41  ;;  %v931_v50 = vpack.c.bf16 %v554_v44, %v553_v42 }
 0x101   : > { %v886_v51 = vpack.c.bf16 %v536_v47, %v535_v45  ;;  %v926_v52 = vpack.c.bf16 %v552_v48, %v551_v46  ;;  %v1024_v53 = vpop.f32.mrb[4].mxu0  ;;  %v1040_v54 = vpop.f32.mrb[4].mxu1 }
 0x102   : > { %963 = vst [vmem:[%s1202_s13 + $0x8] sm:$0xff] %v891_v49   ;;  %971 = vst [vmem:[%s1202_s13 + $0x48] sm:$0xff] %v931_v50   ;;  %v433_v55 = vadd.f32 %v1024_v53, %v1187_v24  ;;  %v497_v56 = vadd.f32 %v1040_v54, %v1187_v24  ;;  %v424_v57 = vpop.f32.mrb[5].mxu0  ;;  %v488_v58 = vpop.f32.mrb[5].mxu1 }
 0x103   : > { %887 = vst [vmem:[%s1202_s13] sm:$0xff] %v886_v51   ;;  %970 = vst [vmem:[%s1202_s13 + $0x40] sm:$0xff] %v926_v52   ;;  %v425_v59 = vadd.f32 %v1187_v24, %v424_v57  ;;  %v489_v60 = vadd.f32 %v1187_v24, %v488_v58  ;;  %v1025_v61 = vpop.f32.mrb[6].mxu0  ;;  %v1041_v62 = vpop.f32.mrb[6].mxu1 }
 0x104   : > { %v436_v63 = vadd.f32 %v1025_v61, %v1187_v24  ;;  %v500_v0 = vadd.f32 %v1041_v62, %v1187_v24  ;;  %v427_v1 = vpop.f32.mrb[7].mxu0  ;;  %v491_v2 = vpop.f32.mrb[7].mxu1  ;;  %v541_v5 = vmax.f32 %v433_v55, 0.0  ;;  %v557_v6 = vmax.f32 %v497_v56, 0.0 }
 0x105   : > { %v428_v3 = vadd.f32 %v1187_v24, %v427_v1  ;;  %v492_v4 = vadd.f32 %v1187_v24, %v491_v2  ;;  %v539_v9 = vmax.f32 %v425_v59, 0.0  ;;  %v555_v10 = vmax.f32 %v489_v60, 0.0 }
 0x106   : > { %v542_v7 = vmax.f32 %v436_v63, 0.0  ;;  %v558_v8 = vmax.f32 %v500_v0, 0.0 }
 0x107   : > { %v540_v11 = vmax.f32 %v428_v3, 0.0  ;;  %v556_v12 = vmax.f32 %v492_v4, 0.0 }
 0x108   : > { %v901_v13 = vpack.c.bf16 %v542_v7, %v541_v5  ;;  %v941_v14 = vpack.c.bf16 %v558_v8, %v557_v6 }
 0x109   : > { %v896_v15 = vpack.c.bf16 %v540_v11, %v539_v9  ;;  %v936_v16 = vpack.c.bf16 %v556_v12, %v555_v10  ;;  %v1028_v17 = vpop.f32.mrb[8].mxu0  ;;  %v1044_v18 = vpop.f32.mrb[8].mxu1 }
 0x10a   : > { %965 = vst [vmem:[%s1202_s13 + $0x18] sm:$0xff] %v901_v13   ;;  %973 = vst [vmem:[%s1202_s13 + $0x58] sm:$0xff] %v941_v14   ;;  %v449_v19 = vadd.f32 %v1028_v17, %v1187_v24  ;;  %v513_v20 = vadd.f32 %v1044_v18, %v1187_v24  ;;  %v440_v21 = vpop.f32.mrb[9].mxu0  ;;  %v504_v22 = vpop.f32.mrb[9].mxu1 }
 0x10b   : > { %964 = vst [vmem:[%s1202_s13 + $0x10] sm:$0xff] %v896_v15   ;;  %972 = vst [vmem:[%s1202_s13 + $0x50] sm:$0xff] %v936_v16   ;;  %v441_v23 = vadd.f32 %v1187_v24, %v440_v21  ;;  %v505_v25 = vadd.f32 %v1187_v24, %v504_v22  ;;  %v1029_v26 = vpop.f32.mrb[10].mxu0  ;;  %v1045_v27 = vpop.f32.mrb[10].mxu1 }
 0x10c   : > { %v452_v28 = vadd.f32 %v1029_v26, %v1187_v24  ;;  %v516_v29 = vadd.f32 %v1045_v27, %v1187_v24  ;;  %v443_v30 = vpop.f32.mrb[11].mxu0  ;;  %v507_v31 = vpop.f32.mrb[11].mxu1  ;;  %v545_v34 = vmax.f32 %v449_v19, 0.0  ;;  %v561_v35 = vmax.f32 %v513_v20, 0.0 }
 0x10d   : > { %v444_v32 = vadd.f32 %v1187_v24, %v443_v30  ;;  %v508_v33 = vadd.f32 %v1187_v24, %v507_v31  ;;  %v543_v38 = vmax.f32 %v441_v23, 0.0  ;;  %v559_v39 = vmax.f32 %v505_v25, 0.0 }
 0x10e   : > { %v546_v36 = vmax.f32 %v452_v28, 0.0  ;;  %v562_v37 = vmax.f32 %v516_v29, 0.0 }
 0x10f   : > { %v544_v40 = vmax.f32 %v444_v32, 0.0  ;;  %v560_v41 = vmax.f32 %v508_v33, 0.0 }
 0x110   : > { %v911_v42 = vpack.c.bf16 %v546_v36, %v545_v34  ;;  %v951_v43 = vpack.c.bf16 %v562_v37, %v561_v35 }
 0x111   : > { %v906_v44 = vpack.c.bf16 %v544_v40, %v543_v38  ;;  %v946_v45 = vpack.c.bf16 %v560_v41, %v559_v39  ;;  %v1032_v46 = vpop.f32.mrb[12].mxu0  ;;  %v1048_v47 = vpop.f32.mrb[12].mxu1 }
 0x112   : > { %967 = vst [vmem:[%s1202_s13 + $0x28] sm:$0xff] %v911_v42   ;;  %975 = vst [vmem:[%s1202_s13 + $0x68] sm:$0xff] %v951_v43   ;;  %v465_v48 = vadd.f32 %v1032_v46, %v1187_v24  ;;  %v529_v49 = vadd.f32 %v1048_v47, %v1187_v24  ;;  %v456_v50 = vpop.f32.mrb[13].mxu0  ;;  %v520_v51 = vpop.f32.mrb[13].mxu1 }
 0x113   : > { %966 = vst [vmem:[%s1202_s13 + $0x20] sm:$0xff] %v906_v44   ;;  %974 = vst [vmem:[%s1202_s13 + $0x60] sm:$0xff] %v946_v45   ;;  %v457_v52 = vadd.f32 %v1187_v24, %v456_v50  ;;  %v521_v53 = vadd.f32 %v1187_v24, %v520_v51  ;;  %v1033_v54 = vpop.f32.mrb[14].mxu0  ;;  %v1049_v55 = vpop.f32.mrb[14].mxu1 }
 0x114   : > { %v468_v56 = vadd.f32 %v1033_v54, %v1187_v24  ;;  %v532_v57 = vadd.f32 %v1049_v55, %v1187_v24  ;;  %v459_v58 = vpop.f32.mrb[15].mxu0  ;;  %v523_v59 = vpop.f32.mrb[15].mxu1  ;;  %v549_v62 = vmax.f32 %v465_v48, 0.0  ;;  %v565_v63 = vmax.f32 %v529_v49, 0.0 }
 0x115   : > { %v460_v60 = vadd.f32 %v1187_v24, %v459_v58  ;;  %v524_v61 = vadd.f32 %v1187_v24, %v523_v59  ;;  %v547_v2 = vmax.f32 %v457_v52, 0.0  ;;  %v563_v3 = vmax.f32 %v521_v53, 0.0 }
 0x116   : > { %v550_v0 = vmax.f32 %v468_v56, 0.0  ;;  %v566_v1 = vmax.f32 %v532_v57, 0.0 }
 0x117   : > { %v548_v4 = vmax.f32 %v460_v60, 0.0  ;;  %v564_v5 = vmax.f32 %v524_v61, 0.0 }
 0x118   : > { %v921_v6 = vpack.c.bf16 %v550_v0, %v549_v62  ;;  %v961_v7 = vpack.c.bf16 %v566_v1, %v565_v63 }
 0x119   : > { %v916_v8 = vpack.c.bf16 %v548_v4, %v547_v2  ;;  %v956_v9 = vpack.c.bf16 %v564_v5, %v563_v3 }
 0x11a   : > { %969 = vst [vmem:[%s1202_s13 + $0x38] sm:$0xff] %v921_v6   ;;  %977 = vst [vmem:[%s1202_s13 + $0x78] sm:$0xff] %v961_v7  }
 0x11b   : > { %968 = vst [vmem:[%s1202_s13 + $0x30] sm:$0xff] %v916_v8   ;;  %976 = vst [vmem:[%s1202_s13 + $0x70] sm:$0xff] %v956_v9  }
 0x11c PF: > { %s13_s12 = sadd.s32 1, %s1104_s12  }
 0x11d   : > { %p10_p4 = scmp.ge.s32.totalorder %s13_s12, 8  }
 0x11f   :  { %12 = sbr.rel (!%p10_p4) target bundleno = 1 (0x1), region = 62 }

// kernel: net_forward.9
= control target key start
LH: loop header
LB: loop body
LE: loop exit
PB: predicated region body
PF: predicated region fallthrough
CT: control target
= control target key end

     0   :  { %s1226_s0 = inlined_call_operand.vmem [shape: bf16[2,2,344,128], index: 0, kind: input, shape index: {}]   ;;  %s1227_s1 = inlined_call_operand.vmem [shape: bf16[344,128], index: 1, kind: output, shape index: {}]  }
   0x1   :  { %v8_v0 = vld [vmem:[%s1226_s0] sm:$0xf]  ;;  %v9_v1 = vld [vmem:[%s1226_s0 + $0x4] sm:$0xf]  ;;  %v359_v2 = vld [vmem:[%s1226_s0 + $0xac] sm:$0xf] }
   0x2   :  { %v360_v3 = vld [vmem:[%s1226_s0 + $0xb0] sm:$0xf]  ;;  %v402_v4 = vld [vmem:[%s1226_s0 + $0x158] sm:$0xf]  ;;  %v403_v5 = vld [vmem:[%s1226_s0 + $0x15c] sm:$0xf]  ;;  %v183_v6 = vmax.bf16 %v359_v2, %v8_v0 }
   0x3   :  { %v445_v7 = vld [vmem:[%s1226_s0 + $0x204] sm:$0xf]  ;;  %v446_v8 = vld [vmem:[%s1226_s0 + $0x208] sm:$0xf]  ;;  %v184_v9 = vmax.bf16 %v360_v3, %v9_v1  ;;  %v11_v13 = vld [vmem:[%s1226_s0 + $0xc] sm:$0xf] }
   0x4   :  { %v10_v10 = vld [vmem:[%s1226_s0 + $0x8] sm:$0xf]  ;;  %v226_v11 = vmax.bf16 %v445_v7, %v402_v4  ;;  %v227_v12 = vmax.bf16 %v446_v8, %v403_v5  ;;  %v361_v14 = vld [vmem:[%s1226_s0 + $0xb4] sm:$0xf]  ;;  %v362_v15 = vld [vmem:[%s1226_s0 + $0xb8] sm:$0xf] }
   0x5   :  { %v404_v16 = vld [vmem:[%s1226_s0 + $0x160] sm:$0xf]  ;;  %v405_v17 = vld [vmem:[%s1226_s0 + $0x164] sm:$0xf]  ;;  %v447_v18 = vld [vmem:[%s1226_s0 + $0x20c] sm:$0xf]  ;;  %v185_v19 = vmax.bf16 %v361_v14, %v10_v10  ;;  %v186_v20 = vmax.bf16 %v362_v15, %v11_v13 }
   0x6   :  { %v269_v21 = vmax.bf16 %v226_v11, %v183_v6  ;;  %v270_v22 = vmax.bf16 %v227_v12, %v184_v9  ;;  %v448_v23 = vld [vmem:[%s1226_s0 + $0x210] sm:$0xf]  ;;  %v228_v24 = vmax.bf16 %v447_v18, %v404_v16  ;;  %v13_v26 = vld [vmem:[%s1226_s0 + $0x14] sm:$0xf]  ;;  %v363_v28 = vld [vmem:[%s1226_s0 + $0xbc] sm:$0xf] }
   0x7   :  { %v12_v25 = vld [vmem:[%s1226_s0 + $0x10] sm:$0xf]  ;;  %v229_v27 = vmax.bf16 %v448_v23, %v405_v17  ;;  %v364_v29 = vld [vmem:[%s1226_s0 + $0xc0] sm:$0xf]  ;;  %v406_v30 = vld [vmem:[%s1226_s0 + $0x168] sm:$0xf] }
   0x8   :  { %v593_v31 = vcombine.low %v269_v21, %v270_v22  ;;  %v271_v32 = vmax.bf16 %v228_v24, %v185_v19  ;;  %v407_v33 = vld [vmem:[%s1226_s0 + $0x16c] sm:$0xf]  ;;  %v449_v34 = vld [vmem:[%s1226_s0 + $0x214] sm:$0xf]  ;;  %v450_v35 = vld [vmem:[%s1226_s0 + $0x218] sm:$0xf]  ;;  %v187_v36 = vmax.bf16 %v363_v28, %v12_v25  ;;  %v188_v37 = vmax.bf16 %v364_v29, %v13_v26 }
   0x9   :  { %v272_v38 = vmax.bf16 %v229_v27, %v186_v20  ;;  %v230_v39 = vmax.bf16 %v449_v34, %v406_v30  ;;  %v231_v40 = vmax.bf16 %v450_v35, %v407_v33  ;;  %v14_v41 = vld [vmem:[%s1226_s0 + $0x18] sm:$0xf]  ;;  %v15_v42 = vld [vmem:[%s1226_s0 + $0x1c] sm:$0xf]  ;;  %v365_v43 = vld [vmem:[%s1226_s0 + $0xc4] sm:$0xf] }
   0xa   :  { %492 = vst [vmem:[%s1227_s1] sm:$0xff] %v593_v31   ;;  %v366_v44 = vld [vmem:[%s1226_s0 + $0xc8] sm:$0xf]  ;;  %v408_v45 = vld [vmem:[%s1226_s0 + $0x170] sm:$0xf]  ;;  %v409_v46 = vld [vmem:[%s1226_s0 + $0x174] sm:$0xf]  ;;  %v189_v47 = vmax.bf16 %v365_v43, %v14_v41 }
   0xb   :  { %v594_v48 = vcombine.low %v271_v32, %v272_v38  ;;  %v273_v49 = vmax.bf16 %v230_v39, %v187_v36  ;;  %v274_v50 = vmax.bf16 %v231_v40, %v188_v37  ;;  %v451_v51 = vld [vmem:[%s1226_s0 + $0x21c] sm:$0xf]  ;;  %v452_v52 = vld [vmem:[%s1226_s0 + $0x220] sm:$0xf]  ;;  %v190_v53 = vmax.bf16 %v366_v44, %v15_v42  ;;  %v17_v57 = vld [vmem:[%s1226_s0 + $0x24] sm:$0xf] }
   0xc   :  { %v16_v54 = vld [vmem:[%s1226_s0 + $0x20] sm:$0xf]  ;;  %v232_v55 = vmax.bf16 %v451_v51, %v408_v45  ;;  %v233_v56 = vmax.bf16 %v452_v52, %v409_v46  ;;  %v367_v58 = vld [vmem:[%s1226_s0 + $0xcc] sm:$0xf]  ;;  %v368_v59 = vld [vmem:[%s1226_s0 + $0xd0] sm:$0xf] }
   0xd   :  { %595 = vst [vmem:[%s1227_s1 + $0x8] sm:$0xff] %v594_v48   ;;  %v596_v60 = vcombine.low %v273_v49, %v274_v50  ;;  %v410_v61 = vld [vmem:[%s1226_s0 + $0x178] sm:$0xf]  ;;  %v411_v62 = vld [vmem:[%s1226_s0 + $0x17c] sm:$0xf]  ;;  %v191_v0 = vmax.bf16 %v367_v58, %v16_v54  ;;  %v192_v1 = vmax.bf16 %v368_v59, %v17_v57 }
   0xe   :  { %v453_v63 = vld [vmem:[%s1226_s0 + $0x224] sm:$0xf]  ;;  %v275_v2 = vmax.bf16 %v232_v55, %v189_v47  ;;  %v276_v3 = vmax.bf16 %v233_v56, %v190_v53  ;;  %v454_v4 = vld [vmem:[%s1226_s0 + $0x228] sm:$0xf]  ;;  %v19_v7 = vld [vmem:[%s1226_s0 + $0x2c] sm:$0xf] }
   0xf   :  { %v234_v5 = vmax.bf16 %v453_v63, %v410_v61  ;;  %v18_v6 = vld [vmem:[%s1226_s0 + $0x28] sm:$0xf]  ;;  %597 = vst [vmem:[%s1227_s1 + $0x10] sm:$0xff] %v596_v60   ;;  %v235_v8 = vmax.bf16 %v454_v4, %v411_v62  ;;  %v369_v9 = vld [vmem:[%s1226_s0 + $0xd4] sm:$0xf] }
  0x10   :  { %v370_v10 = vld [vmem:[%s1226_s0 + $0xd8] sm:$0xf]  ;;  %v412_v11 = vld [vmem:[%s1226_s0 + $0x180] sm:$0xf]  ;;  %v598_v12 = vcombine.low %v275_v2, %v276_v3  ;;  %v413_v14 = vld [vmem:[%s1226_s0 + $0x184] sm:$0xf]  ;;  %v193_v17 = vmax.bf16 %v369_v9, %v18_v6 }
  0x11   :  { %v277_v13 = vmax.bf16 %v234_v5, %v191_v0  ;;  %v455_v15 = vld [vmem:[%s1226_s0 + $0x22c] sm:$0xf]  ;;  %v456_v16 = vld [vmem:[%s1226_s0 + $0x230] sm:$0xf]  ;;  %v194_v18 = vmax.bf16 %v370_v10, %v19_v7  ;;  %v278_v19 = vmax.bf16 %v235_v8, %v192_v1  ;;  %v21_v23 = vld [vmem:[%s1226_s0 + $0x34] sm:$0xf] }
  0x12   :  { %v236_v20 = vmax.bf16 %v455_v15, %v412_v11  ;;  %v237_v21 = vmax.bf16 %v456_v16, %v413_v14  ;;  %v20_v22 = vld [vmem:[%s1226_s0 + $0x30] sm:$0xf]  ;;  %v371_v24 = vld [vmem:[%s1226_s0 + $0xdc] sm:$0xf]  ;;  %599 = vst [vmem:[%s1227_s1 + $0x18] sm:$0xff] %v598_v12  }
  0x13   :  { %v372_v25 = vld [vmem:[%s1226_s0 + $0xe0] sm:$0xf]  ;;  %v414_v26 = vld [vmem:[%s1226_s0 + $0x188] sm:$0xf]  ;;  %v415_v27 = vld [vmem:[%s1226_s0 + $0x18c] sm:$0xf]  ;;  %v195_v28 = vmax.bf16 %v371_v24, %v20_v22  ;;  %v600_v29 = vcombine.low %v277_v13, %v278_v19 }
  0x14   :  { %v279_v30 = vmax.bf16 %v236_v20, %v193_v17  ;;  %v280_v31 = vmax.bf16 %v237_v21, %v194_v18  ;;  %v457_v32 = vld [vmem:[%s1226_s0 + $0x234] sm:$0xf]  ;;  %v458_v33 = vld [vmem:[%s1226_s0 + $0x238] sm:$0xf]  ;;  %v196_v34 = vmax.bf16 %v372_v25, %v21_v23  ;;  %v23_v38 = vld [vmem:[%s1226_s0 + $0x3c] sm:$0xf] }
  0x15   :  { %v22_v35 = vld [vmem:[%s1226_s0 + $0x38] sm:$0xf]  ;;  %v238_v36 = vmax.bf16 %v457_v32, %v414_v26  ;;  %v239_v37 = vmax.bf16 %v458_v33, %v415_v27  ;;  %v373_v39 = vld [vmem:[%s1226_s0 + $0xe4] sm:$0xf]  ;;  %v374_v40 = vld [vmem:[%s1226_s0 + $0xe8] sm:$0xf] }
  0x16   :  { %601 = vst [vmem:[%s1227_s1 + $0x20] sm:$0xff] %v600_v29   ;;  %v602_v41 = vcombine.low %v279_v30, %v280_v31  ;;  %v416_v42 = vld [vmem:[%s1226_s0 + $0x190] sm:$0xf]  ;;  %v417_v43 = vld [vmem:[%s1226_s0 + $0x194] sm:$0xf]  ;;  %v197_v45 = vmax.bf16 %v373_v39, %v22_v35  ;;  %v198_v46 = vmax.bf16 %v374_v40, %v23_v38 }
  0x17   :  { %v459_v44 = vld [vmem:[%s1226_s0 + $0x23c] sm:$0xf]  ;;  %v281_v47 = vmax.bf16 %v238_v36, %v195_v28  ;;  %v282_v48 = vmax.bf16 %v239_v37, %v196_v34  ;;  %v460_v49 = vld [vmem:[%s1226_s0 + $0x240] sm:$0xf]  ;;  %v25_v52 = vld [vmem:[%s1226_s0 + $0x44] sm:$0xf] }
  0x18   :  { %v240_v50 = vmax.bf16 %v459_v44, %v416_v42  ;;  %v24_v51 = vld [vmem:[%s1226_s0 + $0x40] sm:$0xf]  ;;  %603 = vst [vmem:[%s1227_s1 + $0x28] sm:$0xff] %v602_v41   ;;  %v241_v53 = vmax.bf16 %v460_v49, %v417_v43  ;;  %v375_v54 = vld [vmem:[%s1226_s0 + $0xec] sm:$0xf] }
  0x19   :  { %v376_v55 = vld [vmem:[%s1226_s0 + $0xf0] sm:$0xf]  ;;  %v418_v56 = vld [vmem:[%s1226_s0 + $0x198] sm:$0xf]  ;;  %v604_v57 = vcombine.low %v281_v47, %v282_v48  ;;  %v419_v59 = vld [vmem:[%s1226_s0 + $0x19c] sm:$0xf]  ;;  %v199_v62 = vmax.bf16 %v375_v54, %v24_v51 }
  0x1a   :  { %v283_v58 = vmax.bf16 %v240_v50, %v197_v45  ;;  %v461_v60 = vld [vmem:[%s1226_s0 + $0x244] sm:$0xf]  ;;  %v462_v61 = vld [vmem:[%s1226_s0 + $0x248] sm:$0xf]  ;;  %v200_v63 = vmax.bf16 %v376_v55, %v25_v52  ;;  %v284_v0 = vmax.bf16 %v241_v53, %v198_v46  ;;  %v27_v4 = vld [vmem:[%s1226_s0 + $0x4c] sm:$0xf] }
  0x1b   :  { %v242_v1 = vmax.bf16 %v461_v60, %v418_v56  ;;  %v243_v2 = vmax.bf16 %v462_v61, %v419_v59  ;;  %v26_v3 = vld [vmem:[%s1226_s0 + $0x48] sm:$0xf]  ;;  %v377_v5 = vld [vmem:[%s1226_s0 + $0xf4] sm:$0xf]  ;;  %605 = vst [vmem:[%s1227_s1 + $0x30] sm:$0xff] %v604_v57  }
  0x1c   :  { %v378_v6 = vld [vmem:[%s1226_s0 + $0xf8] sm:$0xf]  ;;  %v420_v7 = vld [vmem:[%s1226_s0 + $0x1a0] sm:$0xf]  ;;  %v421_v8 = vld [vmem:[%s1226_s0 + $0x1a4] sm:$0xf]  ;;  %v201_v9 = vmax.bf16 %v377_v5, %v26_v3  ;;  %v606_v10 = vcombine.low %v283_v58, %v284_v0 }
  0x1d   :  { %v285_v11 = vmax.bf16 %v242_v1, %v199_v62  ;;  %v286_v12 = vmax.bf16 %v243_v2, %v200_v63  ;;  %v463_v13 = vld [vmem:[%s1226_s0 + $0x24c] sm:$0xf]  ;;  %v464_v14 = vld [vmem:[%s1226_s0 + $0x250] sm:$0xf]  ;;  %v202_v15 = vmax.bf16 %v378_v6, %v27_v4  ;;  %v29_v19 = vld [vmem:[%s1226_s0 + $0x54] sm:$0xf] }
  0x1e   :  { %v28_v16 = vld [vmem:[%s1226_s0 + $0x50] sm:$0xf]  ;;  %v244_v17 = vmax.bf16 %v463_v13, %v420_v7  ;;  %v245_v18 = vmax.bf16 %v464_v14, %v421_v8  ;;  %v379_v20 = vld [vmem:[%s1226_s0 + $0xfc] sm:$0xf]  ;;  %v380_v21 = vld [vmem:[%s1226_s0 + $0x100] sm:$0xf] }
  0x1f   :  { %607 = vst [vmem:[%s1227_s1 + $0x38] sm:$0xff] %v606_v10   ;;  %v608_v22 = vcombine.low %v285_v11, %v286_v12  ;;  %v422_v23 = vld [vmem:[%s1226_s0 + $0x1a8] sm:$0xf]  ;;  %v423_v24 = vld [vmem:[%s1226_s0 + $0x1ac] sm:$0xf]  ;;  %v203_v26 = vmax.bf16 %v379_v20, %v28_v16  ;;  %v204_v27 = vmax.bf16 %v380_v21, %v29_v19 }
  0x20   :  { %v465_v25 = vld [vmem:[%s1226_s0 + $0x254] sm:$0xf]  ;;  %v287_v28 = vmax.bf16 %v244_v17, %v201_v9  ;;  %v288_v29 = vmax.bf16 %v245_v18, %v202_v15  ;;  %v466_v30 = vld [vmem:[%s1226_s0 + $0x258] sm:$0xf]  ;;  %v31_v33 = vld [vmem:[%s1226_s0 + $0x5c] sm:$0xf] }
  0x21   :  { %v246_v31 = vmax.bf16 %v465_v25, %v422_v23  ;;  %v30_v32 = vld [vmem:[%s1226_s0 + $0x58] sm:$0xf]  ;;  %609 = vst [vmem:[%s1227_s1 + $0x40] sm:$0xff] %v608_v22   ;;  %v247_v34 = vmax.bf16 %v466_v30, %v423_v24  ;;  %v381_v35 = vld [vmem:[%s1226_s0 + $0x104] sm:$0xf] }
  0x22   :  { %v382_v36 = vld [vmem:[%s1226_s0 + $0x108] sm:$0xf]  ;;  %v424_v37 = vld [vmem:[%s1226_s0 + $0x1b0] sm:$0xf]  ;;  %v610_v38 = vcombine.low %v287_v28, %v288_v29  ;;  %v425_v40 = vld [vmem:[%s1226_s0 + $0x1b4] sm:$0xf]  ;;  %v205_v43 = vmax.bf16 %v381_v35, %v30_v32 }
  0x23   :  { %v289_v39 = vmax.bf16 %v246_v31, %v203_v26  ;;  %v467_v41 = vld [vmem:[%s1226_s0 + $0x25c] sm:$0xf]  ;;  %v468_v42 = vld [vmem:[%s1226_s0 + $0x260] sm:$0xf]  ;;  %v206_v44 = vmax.bf16 %v382_v36, %v31_v33  ;;  %v290_v45 = vmax.bf16 %v247_v34, %v204_v27  ;;  %v33_v49 = vld [vmem:[%s1226_s0 + $0x64] sm:$0xf] }
  0x24   :  { %v248_v46 = vmax.bf16 %v467_v41, %v424_v37  ;;  %v249_v47 = vmax.bf16 %v468_v42, %v425_v40  ;;  %v32_v48 = vld [vmem:[%s1226_s0 + $0x60] sm:$0xf]  ;;  %v383_v50 = vld [vmem:[%s1226_s0 + $0x10c] sm:$0xf]  ;;  %611 = vst [vmem:[%s1227_s1 + $0x48] sm:$0xff] %v610_v38  }
  0x25   :  { %v384_v51 = vld [vmem:[%s1226_s0 + $0x110] sm:$0xf]  ;;  %v426_v52 = vld [vmem:[%s1226_s0 + $0x1b8] sm:$0xf]  ;;  %v427_v53 = vld [vmem:[%s1226_s0 + $0x1bc] sm:$0xf]  ;;  %v207_v54 = vmax.bf16 %v383_v50, %v32_v48  ;;  %v612_v55 = vcombine.low %v289_v39, %v290_v45 }
  0x26   :  { %v291_v56 = vmax.bf16 %v248_v46, %v205_v43  ;;  %v292_v57 = vmax.bf16 %v249_v47, %v206_v44  ;;  %v469_v58 = vld [vmem:[%s1226_s0 + $0x264] sm:$0xf]  ;;  %v470_v59 = vld [vmem:[%s1226_s0 + $0x268] sm:$0xf]  ;;  %v208_v60 = vmax.bf16 %v384_v51, %v33_v49  ;;  %v35_v0 = vld [vmem:[%s1226_s0 + $0x6c] sm:$0xf] }
  0x27   :  { %v34_v61 = vld [vmem:[%s1226_s0 + $0x68] sm:$0xf]  ;;  %v250_v62 = vmax.bf16 %v469_v58, %v426_v52  ;;  %v251_v63 = vmax.bf16 %v470_v59, %v427_v53  ;;  %v385_v1 = vld [vmem:[%s1226_s0 + $0x114] sm:$0xf]  ;;  %v386_v2 = vld [vmem:[%s1226_s0 + $0x118] sm:$0xf] }
  0x28   :  { %613 = vst [vmem:[%s1227_s1 + $0x50] sm:$0xff] %v612_v55   ;;  %v614_v3 = vcombine.low %v291_v56, %v292_v57  ;;  %v428_v4 = vld [vmem:[%s1226_s0 + $0x1c0] sm:$0xf]  ;;  %v429_v5 = vld [vmem:[%s1226_s0 + $0x1c4] sm:$0xf]  ;;  %v209_v7 = vmax.bf16 %v385_v1, %v34_v61  ;;  %v210_v8 = vmax.bf16 %v386_v2, %v35_v0 }
  0x29   :  { %v471_v6 = vld [vmem:[%s1226_s0 + $0x26c] sm:$0xf]  ;;  %v293_v9 = vmax.bf16 %v250_v62, %v207_v54  ;;  %v294_v10 = vmax.bf16 %v251_v63, %v208_v60  ;;  %v472_v11 = vld [vmem:[%s1226_s0 + $0x270] sm:$0xf]  ;;  %v37_v14 = vld [vmem:[%s1226_s0 + $0x74] sm:$0xf] }
  0x2a   :  { %v252_v12 = vmax.bf16 %v471_v6, %v428_v4  ;;  %v36_v13 = vld [vmem:[%s1226_s0 + $0x70] sm:$0xf]  ;;  %615 = vst [vmem:[%s1227_s1 + $0x58] sm:$0xff] %v614_v3   ;;  %v253_v15 = vmax.bf16 %v472_v11, %v429_v5  ;;  %v387_v16 = vld [vmem:[%s1226_s0 + $0x11c] sm:$0xf] }
  0x2b   :  { %v388_v17 = vld [vmem:[%s1226_s0 + $0x120] sm:$0xf]  ;;  %v430_v18 = vld [vmem:[%s1226_s0 + $0x1c8] sm:$0xf]  ;;  %v616_v19 = vcombine.low %v293_v9, %v294_v10  ;;  %v431_v21 = vld [vmem:[%s1226_s0 + $0x1cc] sm:$0xf]  ;;  %v211_v24 = vmax.bf16 %v387_v16, %v36_v13 }
  0x2c   :  { %v295_v20 = vmax.bf16 %v252_v12, %v209_v7  ;;  %v473_v22 = vld [vmem:[%s1226_s0 + $0x274] sm:$0xf]  ;;  %v474_v23 = vld [vmem:[%s1226_s0 + $0x278] sm:$0xf]  ;;  %v212_v25 = vmax.bf16 %v388_v17, %v37_v14  ;;  %v296_v26 = vmax.bf16 %v253_v15, %v210_v8  ;;  %v39_v30 = vld [vmem:[%s1226_s0 + $0x7c] sm:$0xf] }
  0x2d   :  { %v254_v27 = vmax.bf16 %v473_v22, %v430_v18  ;;  %v255_v28 = vmax.bf16 %v474_v23, %v431_v21  ;;  %v38_v29 = vld [vmem:[%s1226_s0 + $0x78] sm:$0xf]  ;;  %v389_v31 = vld [vmem:[%s1226_s0 + $0x124] sm:$0xf]  ;;  %617 = vst [vmem:[%s1227_s1 + $0x60] sm:$0xff] %v616_v19  }
  0x2e   :  { %v390_v32 = vld [vmem:[%s1226_s0 + $0x128] sm:$0xf]  ;;  %v432_v33 = vld [vmem:[%s1226_s0 + $0x1d0] sm:$0xf]  ;;  %v433_v34 = vld [vmem:[%s1226_s0 + $0x1d4] sm:$0xf]  ;;  %v213_v35 = vmax.bf16 %v389_v31, %v38_v29  ;;  %v618_v36 = vcombine.low %v295_v20, %v296_v26 }
  0x2f   :  { %v297_v37 = vmax.bf16 %v254_v27, %v211_v24  ;;  %v298_v38 = vmax.bf16 %v255_v28, %v212_v25  ;;  %v475_v39 = vld [vmem:[%s1226_s0 + $0x27c] sm:$0xf]  ;;  %v476_v40 = vld [vmem:[%s1226_s0 + $0x280] sm:$0xf]  ;;  %v214_v41 = vmax.bf16 %v390_v32, %v39_v30  ;;  %v41_v45 = vld [vmem:[%s1226_s0 + $0x84] sm:$0xf] }
  0x30   :  { %v40_v42 = vld [vmem:[%s1226_s0 + $0x80] sm:$0xf]  ;;  %v256_v43 = vmax.bf16 %v475_v39, %v432_v33  ;;  %v257_v44 = vmax.bf16 %v476_v40, %v433_v34  ;;  %v391_v46 = vld [vmem:[%s1226_s0 + $0x12c] sm:$0xf]  ;;  %v392_v47 = vld [vmem:[%s1226_s0 + $0x130] sm:$0xf] }
  0x31   :  { %619 = vst [vmem:[%s1227_s1 + $0x68] sm:$0xff] %v618_v36   ;;  %v620_v48 = vcombine.low %v297_v37, %v298_v38  ;;  %v434_v49 = vld [vmem:[%s1226_s0 + $0x1d8] sm:$0xf]  ;;  %v435_v50 = vld [vmem:[%s1226_s0 + $0x1dc] sm:$0xf]  ;;  %v215_v52 = vmax.bf16 %v391_v46, %v40_v42  ;;  %v216_v53 = vmax.bf16 %v392_v47, %v41_v45 }
  0x32   :  { %v477_v51 = vld [vmem:[%s1226_s0 + $0x284] sm:$0xf]  ;;  %v299_v54 = vmax.bf16 %v256_v43, %v213_v35  ;;  %v300_v55 = vmax.bf16 %v257_v44, %v214_v41  ;;  %v478_v56 = vld [vmem:[%s1226_s0 + $0x288] sm:$0xf]  ;;  %v43_v59 = vld [vmem:[%s1226_s0 + $0x8c] sm:$0xf] }
  0x33   :  { %v258_v57 = vmax.bf16 %v477_v51, %v434_v49  ;;  %v42_v58 = vld [vmem:[%s1226_s0 + $0x88] sm:$0xf]  ;;  %621 = vst [vmem:[%s1227_s1 + $0x70] sm:$0xff] %v620_v48   ;;  %v259_v60 = vmax.bf16 %v478_v56, %v435_v50  ;;  %v393_v61 = vld [vmem:[%s1226_s0 + $0x134] sm:$0xf] }
  0x34   :  { %v394_v62 = vld [vmem:[%s1226_s0 + $0x138] sm:$0xf]  ;;  %v436_v63 = vld [vmem:[%s1226_s0 + $0x1e0] sm:$0xf]  ;;  %v622_v0 = vcombine.low %v299_v54, %v300_v55  ;;  %v437_v2 = vld [vmem:[%s1226_s0 + $0x1e4] sm:$0xf]  ;;  %v217_v5 = vmax.bf16 %v393_v61, %v42_v58 }
  0x35   :  { %v301_v1 = vmax.bf16 %v258_v57, %v215_v52  ;;  %v479_v3 = vld [vmem:[%s1226_s0 + $0x28c] sm:$0xf]  ;;  %v480_v4 = vld [vmem:[%s1226_s0 + $0x290] sm:$0xf]  ;;  %v218_v6 = vmax.bf16 %v394_v62, %v43_v59  ;;  %v302_v7 = vmax.bf16 %v259_v60, %v216_v53  ;;  %v45_v11 = vld [vmem:[%s1226_s0 + $0x94] sm:$0xf] }
  0x36   :  { %v260_v8 = vmax.bf16 %v479_v3, %v436_v63  ;;  %v261_v9 = vmax.bf16 %v480_v4, %v437_v2  ;;  %v44_v10 = vld [vmem:[%s1226_s0 + $0x90] sm:$0xf]  ;;  %v395_v12 = vld [vmem:[%s1226_s0 + $0x13c] sm:$0xf]  ;;  %623 = vst [vmem:[%s1227_s1 + $0x78] sm:$0xff] %v622_v0  }
  0x37   :  { %v396_v13 = vld [vmem:[%s1226_s0 + $0x140] sm:$0xf]  ;;  %v438_v14 = vld [vmem:[%s1226_s0 + $0x1e8] sm:$0xf]  ;;  %v439_v15 = vld [vmem:[%s1226_s0 + $0x1ec] sm:$0xf]  ;;  %v219_v16 = vmax.bf16 %v395_v12, %v44_v10  ;;  %v624_v17 = vcombine.low %v301_v1, %v302_v7 }
  0x38   :  { %v303_v18 = vmax.bf16 %v260_v8, %v217_v5  ;;  %v304_v19 = vmax.bf16 %v261_v9, %v218_v6  ;;  %v481_v20 = vld [vmem:[%s1226_s0 + $0x294] sm:$0xf]  ;;  %v482_v21 = vld [vmem:[%s1226_s0 + $0x298] sm:$0xf]  ;;  %v220_v22 = vmax.bf16 %v396_v13, %v45_v11  ;;  %v47_v26 = vld [vmem:[%s1226_s0 + $0x9c] sm:$0xf] }
  0x39   :  { %v46_v23 = vld [vmem:[%s1226_s0 + $0x98] sm:$0xf]  ;;  %v262_v24 = vmax.bf16 %v481_v20, %v438_v14  ;;  %v263_v25 = vmax.bf16 %v482_v21, %v439_v15  ;;  %v397_v27 = vld [vmem:[%s1226_s0 + $0x144] sm:$0xf]  ;;  %v398_v28 = vld [vmem:[%s1226_s0 + $0x148] sm:$0xf] }
  0x3a   :  { %625 = vst [vmem:[%s1227_s1 + $0x80] sm:$0xff] %v624_v17   ;;  %v626_v29 = vcombine.low %v303_v18, %v304_v19  ;;  %v440_v30 = vld [vmem:[%s1226_s0 + $0x1f0] sm:$0xf]  ;;  %v441_v31 = vld [vmem:[%s1226_s0 + $0x1f4] sm:$0xf]  ;;  %v221_v33 = vmax.bf16 %v397_v27, %v46_v23  ;;  %v222_v34 = vmax.bf16 %v398_v28, %v47_v26 }
  0x3b   :  { %v483_v32 = vld [vmem:[%s1226_s0 + $0x29c] sm:$0xf]  ;;  %v305_v35 = vmax.bf16 %v262_v24, %v219_v16  ;;  %v306_v36 = vmax.bf16 %v263_v25, %v220_v22  ;;  %v484_v37 = vld [vmem:[%s1226_s0 + $0x2a0] sm:$0xf]  ;;  %v49_v40 = vld [vmem:[%s1226_s0 + $0xa4] sm:$0xf] }
  0x3c   :  { %v264_v38 = vmax.bf16 %v483_v32, %v440_v30  ;;  %v48_v39 = vld [vmem:[%s1226_s0 + $0xa0] sm:$0xf]  ;;  %627 = vst [vmem:[%s1227_s1 + $0x88] sm:$0xff] %v626_v29   ;;  %v265_v41 = vmax.bf16 %v484_v37, %v441_v31  ;;  %v399_v42 = vld [vmem:[%s1226_s0 + $0x14c] sm:$0xf] }
  0x3d   :  { %v400_v43 = vld [vmem:[%s1226_s0 + $0x150] sm:$0xf]  ;;  %v442_v44 = vld [vmem:[%s1226_s0 + $0x1f8] sm:$0xf]  ;;  %v628_v45 = vcombine.low %v305_v35, %v306_v36  ;;  %v443_v47 = vld [vmem:[%s1226_s0 + $0x1fc] sm:$0xf]  ;;  %v223_v50 = vmax.bf16 %v399_v42, %v48_v39 }
  0x3e   :  { %v307_v46 = vmax.bf16 %v264_v38, %v221_v33  ;;  %v485_v48 = vld [vmem:[%s1226_s0 + $0x2a4] sm:$0xf]  ;;  %v486_v49 = vld [vmem:[%s1226_s0 + $0x2a8] sm:$0xf]  ;;  %v224_v51 = vmax.bf16 %v400_v43, %v49_v40  ;;  %v308_v52 = vmax.bf16 %v265_v41, %v222_v34  ;;  %v401_v56 = vld [vmem:[%s1226_s0 + $0x154] sm:$0xf] }
  0x3f   :  { %v266_v53 = vmax.bf16 %v485_v48, %v442_v44  ;;  %v267_v54 = vmax.bf16 %v486_v49, %v443_v47  ;;  %v50_v55 = vld [vmem:[%s1226_s0 + $0xa8] sm:$0xf]  ;;  %v444_v57 = vld [vmem:[%s1226_s0 + $0x200] sm:$0xf]  ;;  %629 = vst [vmem:[%s1227_s1 + $0x90] sm:$0xff] %v628_v45  }
  0x40   :  { %v487_v58 = vld [vmem:[%s1226_s0 + $0x2ac] sm:$0xf]  ;;  %v225_v59 = vmax.bf16 %v401_v56, %v50_v55  ;;  %v630_v60 = vcombine.low %v307_v46, %v308_v52 }
  0x41   :  { %v309_v61 = vmax.bf16 %v266_v53, %v223_v50  ;;  %v310_v62 = vmax.bf16 %v267_v54, %v224_v51  ;;  %v268_v63 = vmax.bf16 %v487_v58, %v444_v57 }
  0x42   :  { %631 = vst [vmem:[%s1227_s1 + $0x98] sm:$0xff] %v630_v60  }
  0x43   :  { %v632_v0 = vcombine.low %v309_v61, %v310_v62  ;;  %v311_v1 = vmax.bf16 %v268_v63, %v225_v59 }
  0x45   :  { %633 = vst [vmem:[%s1227_s1 + $0xa0] sm:$0xff] %v632_v0   ;;  %354 = vst [vmem:[%s1227_s1 + $0xa8] sm:$0xf] %v311_v1 }

// kernel: net_forward.11
= control target key start
LH: loop header
LB: loop body
LE: loop exit
PB: predicated region body
PF: predicated region fallthrough
CT: control target
= control target key end

     0   :  { %s218_s0 = inlined_call_operand.vmem [shape: bf16[2,2,56,128], index: 0, kind: input, shape index: {}]   ;;  %s219_s1 = inlined_call_operand.vmem [shape: bf16[56,128], index: 1, kind: output, shape index: {}]  }
   0x1   :  { %v8_v0 = vld [vmem:[%s218_s0] sm:$0xf]  ;;  %v9_v1 = vld [vmem:[%s218_s0 + $0x4] sm:$0xf]  ;;  %v71_v2 = vld [vmem:[%s218_s0 + $0x1c] sm:$0xf] }
   0x2   :  { %v72_v3 = vld [vmem:[%s218_s0 + $0x20] sm:$0xf]  ;;  %v78_v4 = vld [vmem:[%s218_s0 + $0x38] sm:$0xf]  ;;  %v79_v5 = vld [vmem:[%s218_s0 + $0x3c] sm:$0xf]  ;;  %v39_v6 = vmax.bf16 %v71_v2, %v8_v0 }
   0x3   :  { %v85_v7 = vld [vmem:[%s218_s0 + $0x54] sm:$0xf]  ;;  %v86_v8 = vld [vmem:[%s218_s0 + $0x58] sm:$0xf]  ;;  %v40_v9 = vmax.bf16 %v72_v3, %v9_v1  ;;  %v10_v10 = vld [vmem:[%s218_s0 + $0x8] sm:$0xf] }
   0x4   :  { %v46_v11 = vmax.bf16 %v85_v7, %v78_v4  ;;  %v47_v12 = vmax.bf16 %v86_v8, %v79_v5  ;;  %v11_v13 = vld [vmem:[%s218_s0 + $0xc] sm:$0xf]  ;;  %v73_v14 = vld [vmem:[%s218_s0 + $0x24] sm:$0xf]  ;;  %v74_v15 = vld [vmem:[%s218_s0 + $0x28] sm:$0xf] }
   0x5   :  { %v80_v16 = vld [vmem:[%s218_s0 + $0x40] sm:$0xf]  ;;  %v81_v17 = vld [vmem:[%s218_s0 + $0x44] sm:$0xf]  ;;  %v87_v18 = vld [vmem:[%s218_s0 + $0x5c] sm:$0xf]  ;;  %v41_v19 = vmax.bf16 %v73_v14, %v10_v10  ;;  %v42_v20 = vmax.bf16 %v74_v15, %v11_v13 }
   0x6   :  { %v53_v21 = vmax.bf16 %v46_v11, %v39_v6  ;;  %v54_v22 = vmax.bf16 %v47_v12, %v40_v9  ;;  %v88_v23 = vld [vmem:[%s218_s0 + $0x60] sm:$0xf]  ;;  %v48_v24 = vmax.bf16 %v87_v18, %v80_v16  ;;  %v12_v25 = vld [vmem:[%s218_s0 + $0x10] sm:$0xf]  ;;  %v13_v26 = vld [vmem:[%s218_s0 + $0x14] sm:$0xf] }
   0x7   :  { %v49_v27 = vmax.bf16 %v88_v23, %v81_v17  ;;  %v75_v28 = vld [vmem:[%s218_s0 + $0x2c] sm:$0xf]  ;;  %v76_v29 = vld [vmem:[%s218_s0 + $0x30] sm:$0xf]  ;;  %v82_v30 = vld [vmem:[%s218_s0 + $0x48] sm:$0xf] }
   0x8   :  { %v107_v31 = vcombine.low %v53_v21, %v54_v22  ;;  %v55_v32 = vmax.bf16 %v48_v24, %v41_v19  ;;  %v83_v33 = vld [vmem:[%s218_s0 + $0x4c] sm:$0xf]  ;;  %v89_v34 = vld [vmem:[%s218_s0 + $0x64] sm:$0xf]  ;;  %v90_v35 = vld [vmem:[%s218_s0 + $0x68] sm:$0xf]  ;;  %v43_v36 = vmax.bf16 %v75_v28, %v12_v25  ;;  %v44_v37 = vmax.bf16 %v76_v29, %v13_v26 }
   0x9   :  { %v56_v38 = vmax.bf16 %v49_v27, %v42_v20  ;;  %v50_v39 = vmax.bf16 %v89_v34, %v82_v30  ;;  %v51_v40 = vmax.bf16 %v90_v35, %v83_v33  ;;  %v14_v41 = vld [vmem:[%s218_s0 + $0x18] sm:$0xf]  ;;  %v77_v42 = vld [vmem:[%s218_s0 + $0x34] sm:$0xf]  ;;  %v84_v43 = vld [vmem:[%s218_s0 + $0x50] sm:$0xf] }
   0xa   :  { %96 = vst [vmem:[%s219_s1] sm:$0xff] %v107_v31   ;;  %v91_v44 = vld [vmem:[%s218_s0 + $0x6c] sm:$0xf]  ;;  %v45_v45 = vmax.bf16 %v77_v42, %v14_v41 }
   0xb   :  { %v108_v46 = vcombine.low %v55_v32, %v56_v38  ;;  %v57_v47 = vmax.bf16 %v50_v39, %v43_v36  ;;  %v58_v48 = vmax.bf16 %v51_v40, %v44_v37  ;;  %v52_v49 = vmax.bf16 %v91_v44, %v84_v43 }
   0xd   :  { %109 = vst [vmem:[%s219_s1 + $0x8] sm:$0xff] %v108_v46   ;;  %v110_v50 = vcombine.low %v57_v47, %v58_v48  ;;  %v59_v51 = vmax.bf16 %v52_v49, %v45_v45 }
   0xf   :  { %111 = vst [vmem:[%s219_s1 + $0x10] sm:$0xff] %v110_v50   ;;  %66 = vst [vmem:[%s219_s1 + $0x18] sm:$0xf] %v59_v51 }

// kernel: net_forward.10
= control target key start
LH: loop header
LB: loop body
LE: loop exit
PB: predicated region body
PF: predicated region fallthrough
CT: control target
= control target key end

     0   :  { %s1133_s1 = inlined_call_operand.vmem [shape: bf16[256,128], index: 1, kind: input, shape index: {}]   ;;  %s1134_s0 = inlined_call_operand.vmem [shape: bf16[200,256], index: 0, kind: input, shape index: {}]   ;;  %s1135_s2 = inlined_call_operand.vmem [shape: f32[1,128], index: 2, kind: input, shape index: {}]   ;;  %s1136_s3 = inlined_call_operand.vmem [shape: bf16[200,128], index: 3, kind: output, shape index: {}]  }
   0x1   :  { %v867_v0 = vld [vmem:[%s1133_s1 + $0x40] sm:$0xff]   ;;  %v869_v2 = vld [vmem:[%s1133_s1 + $0x48] sm:$0xff]   ;;  %v871_v4 = vld [vmem:[%s1133_s1 + $0x50] sm:$0xff]  }
   0x2   :  { %v868_v1 = vld [vmem:[%s1133_s1] sm:$0xff]   ;;  %757 = vmatprep.subr.bf16.mxu0 %v867_v0  ;;  %851 = vmatprep.subr.bf16.mxu1 %v867_v0  ;;  %v870_v3 = vld [vmem:[%s1133_s1 + $0x8] sm:$0xff]   ;;  %v872_v5 = vld [vmem:[%s1133_s1 + $0x10] sm:$0xff]  }
   0x3   :  { %758 = vmatpush3.bf16.msra.mxu0 %v868_v1  ;;  %859 = vmatpush3.bf16.msra.mxu1 %v868_v1  ;;  %v873_v6 = vld [vmem:[%s1133_s1 + $0x58] sm:$0xff]   ;;  %v875_v8 = vld [vmem:[%s1133_s1 + $0x60] sm:$0xff]   ;;  %v877_v10 = vld [vmem:[%s1133_s1 + $0x68] sm:$0xff]  }
   0x4   :  { %759 = vmatprep.subr.bf16.mxu0 %v869_v2  ;;  %852 = vmatprep.subr.bf16.mxu1 %v869_v2  ;;  %v874_v7 = vld [vmem:[%s1133_s1 + $0x18] sm:$0xff]   ;;  %v876_v9 = vld [vmem:[%s1133_s1 + $0x20] sm:$0xff]   ;;  %v878_v13 = vld [vmem:[%s1133_s1 + $0x28] sm:$0xff]  }
   0x5   :  { %v885_v11 = vld [vmem:[%s1134_s0 + $0x4] ss:$8 sps:$4 sm:$0xff]   ;;  %v888_v12 = vld [vmem:[%s1134_s0 + $0x74] ss:$8 sps:$4 sm:$0xff]   ;;  %v883_v18 = vld [vmem:[%s1134_s0] ss:$8 sps:$4 sm:$0xff]  }
   0x6   :  { %v879_v14 = vld [vmem:[%s1133_s1 + $0x70] sm:$0xff]   ;;  %334 = vmatprep.mubr.bf16.mxu0 %v885_v11  ;;  %390 = vmatprep.mubr.bf16.mxu1 %v888_v12  ;;  %v881_v16 = vld [vmem:[%s1133_s1 + $0x78] sm:$0xff]   ;;  %v892_v21 = vld [vmem:[%s1134_s0 + $0x84] ss:$8 sps:$4 sm:$0xff]  }
   0x7   :  { %760 = vmatpush3.bf16.msra.mxu0 %v870_v3  ;;  %860 = vmatpush3.bf16.msra.mxu1 %v870_v3  ;;  %v880_v15 = vld [vmem:[%s1133_s1 + $0x30] sm:$0xff]   ;;  %v882_v17 = vld [vmem:[%s1133_s1 + $0x38] sm:$0xff]   ;;  %v896_v23 = vld [vmem:[%s1134_s0 + $0x80] ss:$8 sps:$4 sm:$0xff]  }
   0x8   :  { %761 = vmatprep.subr.bf16.mxu0 %v871_v4  ;;  %853 = vmatprep.subr.bf16.mxu1 %v871_v4  ;;  %v886_v19 = vld [vmem:[%s1134_s0 + $0x70] ss:$8 sps:$4 sm:$0xff]   ;;  %v889_v20 = vld [vmem:[%s1134_s0 + $0x14] ss:$8 sps:$4 sm:$0xff]   ;;  %v894_v24 = vld [vmem:[%s1134_s0 + $0x24] ss:$8 sps:$4 sm:$0xff]  }
   0x9   :  { %v891_v22 = vld [vmem:[%s1134_s0 + $0x10] ss:$8 sps:$4 sm:$0xff]   ;;  %v898_v25 = vld [vmem:[%s1134_s0 + $0x94] ss:$8 sps:$4 sm:$0xff]   ;;  %v897_v26 = vld [vmem:[%s1134_s0 + $0x20] ss:$8 sps:$4 sm:$0xff]  }
   0xa   :  { %v902_v27 = vld [vmem:[%s1134_s0 + $0x90] ss:$8 sps:$4 sm:$0xff]   ;;  %v900_v28 = vld [vmem:[%s1134_s0 + $0x34] ss:$8 sps:$4 sm:$0xff]   ;;  %v904_v29 = vld [vmem:[%s1134_s0 + $0xa4] ss:$8 sps:$4 sm:$0xff]  }
   0xb   :  { %762 = vmatpush3.bf16.msra.mxu0 %v872_v5  ;;  %861 = vmatpush3.bf16.msra.mxu1 %v872_v5  ;;  %v903_v30 = vld [vmem:[%s1134_s0 + $0x30] ss:$8 sps:$4 sm:$0xff]   ;;  %v908_v31 = vld [vmem:[%s1134_s0 + $0xa0] ss:$8 sps:$4 sm:$0xff]   ;;  %v906_v32 = vld [vmem:[%s1134_s0 + $0x44] ss:$8 sps:$4 sm:$0xff]  }
   0xc   :  { %763 = vmatprep.subr.bf16.mxu0 %v873_v6  ;;  %854 = vmatprep.subr.bf16.mxu1 %v873_v6  ;;  %v910_v33 = vld [vmem:[%s1134_s0 + $0xb4] ss:$8 sps:$4 sm:$0xff]   ;;  %v39_v34 = vld [vmem:[%s1134_s0 + $0xc0] sm:$0xff]  ;;  %v914_v36 = vld [vmem:[%s1134_s0 + $0xb0] ss:$8 sps:$4 sm:$0xff]  }
   0xd   :  { %v909_v35 = vld [vmem:[%s1134_s0 + $0x40] ss:$8 sps:$4 sm:$0xff]   ;;  %v912_v37 = vld [vmem:[%s1134_s0 + $0x54] ss:$8 sps:$4 sm:$0xff]   ;;  %v619_v38 = vcombine.high %v39_v34, %v39_v34  ;;  %v915_v39 = vld [vmem:[%s1134_s0 + $0x50] ss:$8 sps:$4 sm:$0xff]   ;;  %v618_v40 = vcombine.low %v39_v34, %v39_v34 }
   0xe   :  { %v917_v41 = vld [vmem:[%s1134_s0 + $0x64] ss:$8 sps:$4 sm:$0xff]   ;;  %v920_v42 = vld [vmem:[%s1134_s0 + $0x60] ss:$8 sps:$4 sm:$0xff]  }
   0xf   :  { %764 = vmatpush3.bf16.msra.mxu0 %v874_v7  ;;  %862 = vmatpush3.bf16.msra.mxu1 %v874_v7  ;;  %v1067_v45 = vld [vmem:[%s1135_s2] ss:$0 sm:$0xff] }
  0x10   :  { %765 = vmatprep.subr.bf16.mxu0 %v875_v8  ;;  %855 = vmatprep.subr.bf16.mxu1 %v875_v8 }
  0x13   :  { %766 = vmatpush3.bf16.msra.mxu0 %v876_v9  ;;  %863 = vmatpush3.bf16.msra.mxu1 %v876_v9 }
  0x14   :  { %767 = vmatprep.subr.bf16.mxu0 %v877_v10  ;;  %856 = vmatprep.subr.bf16.mxu1 %v877_v10 }
  0x17   :  { %768 = vmatpush3.bf16.msra.mxu0 %v878_v13  ;;  %864 = vmatpush3.bf16.msra.mxu1 %v878_v13 }
  0x18   :  { %769 = vmatprep.subr.bf16.mxu0 %v879_v14  ;;  %857 = vmatprep.subr.bf16.mxu1 %v879_v14 }
  0x1b   :  { %770 = vmatpush3.bf16.msra.mxu0 %v880_v15  ;;  %865 = vmatpush3.bf16.msra.mxu1 %v880_v15 }
  0x1c   :  { %771 = vmatprep.subr.bf16.mxu0 %v881_v16  ;;  %858 = vmatprep.subr.bf16.mxu1 %v881_v16 }
  0x1f   :  { %772 = vmatpush3.bf16.msra.mxu0 %v882_v17  ;;  %866 = vmatpush3.bf16.msra.mxu1 %v882_v17 }
  0x22   :  { %335 = vmatmul.mubr.bf16.vlgmr.msra.gmra.mrb[0].mxu0 %v883_v18  ;;  %391 = vmatmul.mubr.bf16.vlgmr.msra.gmra.mrb[0].mxu1 %v886_v19 }
  0x23   :  { %342 = vmatprep.mubr.bf16.mxu0 %v889_v20  ;;  %398 = vmatprep.mubr.bf16.mxu1 %v892_v21 }
  0x2a   :  { %343 = vmatmul.mubr.bf16.gmra.mrb[4].mxu0 %v891_v22  ;;  %399 = vmatmul.mubr.bf16.gmra.mrb[4].mxu1 %v896_v23 }
  0x2b   :  { %350 = vmatprep.mubr.bf16.mxu0 %v894_v24  ;;  %406 = vmatprep.mubr.bf16.mxu1 %v898_v25 }
  0x32   :  { %351 = vmatmul.mubr.bf16.gmra.mrb[8].mxu0 %v897_v26  ;;  %407 = vmatmul.mubr.bf16.gmra.mrb[8].mxu1 %v902_v27 }
  0x33   :  { %358 = vmatprep.mubr.bf16.mxu0 %v900_v28  ;;  %414 = vmatprep.mubr.bf16.mxu1 %v904_v29 }
  0x3a   :  { %359 = vmatmul.mubr.bf16.gmra.mrb[12].mxu0 %v903_v30  ;;  %415 = vmatmul.mubr.bf16.gmra.mrb[12].mxu1 %v908_v31 }
  0x3b   :  { %366 = vmatprep.mubr.bf16.mxu0 %v906_v32  ;;  %422 = vmatprep.mubr.bf16.mxu1 %v910_v33 }
  0x42   :  { %367 = vmatmul.mubr.bf16.gmra.mrb[16].mxu0 %v909_v35  ;;  %423 = vmatmul.mubr.bf16.gmra.mrb[16].mxu1 %v914_v36 }
  0x43   :  { %374 = vmatprep.mubr.bf16.mxu0 %v912_v37  ;;  %430 = vmatprep.mubr.bf16.mxu1 %v619_v38 }
  0x4a   :  { %375 = vmatmul.mubr.bf16.gmra.mrb[20].mxu0 %v915_v39  ;;  %431 = vmatmul.mubr.bf16.gmra.mrb[20].mxu1 %v618_v40 }
  0x4b   :  { %382 = vmatprep.mubr.bf16.mxu0 %v917_v41 }
  0x52   :  { %383 = vmatmul.mubr.bf16.gmra.mrb[24].mxu0 %v920_v42 }
  0xf5   :  { %v773_v43 = vpop.f32.mrb[0].mxu0  ;;  %v815_v44 = vpop.f32.mrb[0].mxu1 }
  0xf6   :  { %v774_v46 = vpop.f32.mrb[1].mxu0  ;;  %v816_v47 = vpop.f32.mrb[1].mxu1 }
  0xf7   :  { %v775_v48 = vadd.f32 %v774_v46, %v773_v43  ;;  %v776_v49 = vpop.f32.mrb[2].mxu0  ;;  %v817_v50 = vadd.f32 %v816_v47, %v815_v44  ;;  %v818_v51 = vpop.f32.mrb[2].mxu1 }
  0xf8   :  { %v777_v52 = vpop.f32.mrb[3].mxu0  ;;  %v819_v53 = vpop.f32.mrb[3].mxu1 }
  0xf9   :  { %v337_v54 = vadd.f32 %v775_v48, %v1067_v45  ;;  %v778_v55 = vadd.f32 %v777_v52, %v776_v49  ;;  %v393_v56 = vadd.f32 %v817_v50, %v1067_v45  ;;  %v820_v57 = vadd.f32 %v819_v53, %v818_v51 }
  0xfb   :  { %v340_v58 = vadd.f32 %v778_v55, %v1067_v45  ;;  %v452_v59 = vmax.f32 %v393_v56, 0.0  ;;  %v396_v60 = vadd.f32 %v820_v57, %v1067_v45  ;;  %v438_v61 = vmax.f32 %v337_v54, 0.0 }
  0xfd   :  { %v439_v62 = vmax.f32 %v340_v58, 0.0  ;;  %v779_v63 = vpop.f32.mrb[4].mxu0  ;;  %v453_v0 = vmax.f32 %v396_v60, 0.0  ;;  %v821_v1 = vpop.f32.mrb[4].mxu1 }
  0xfe   :  { %v780_v2 = vpop.f32.mrb[5].mxu0  ;;  %v822_v3 = vpop.f32.mrb[5].mxu1 }
  0xff   :  { %v689_v4 = vpack.c.bf16 %v439_v62, %v438_v61  ;;  %v781_v5 = vadd.f32 %v780_v2, %v779_v63  ;;  %v782_v6 = vpop.f32.mrb[6].mxu0  ;;  %v724_v7 = vpack.c.bf16 %v453_v0, %v452_v59  ;;  %v823_v8 = vadd.f32 %v822_v3, %v821_v1  ;;  %v824_v9 = vpop.f32.mrb[6].mxu1 }
 0x100   :  { %v783_v10 = vpop.f32.mrb[7].mxu0  ;;  %v825_v11 = vpop.f32.mrb[7].mxu1 }
 0x101   :  { %690 = vst [vmem:[%s1136_s3] sm:$0xff] %v689_v4   ;;  %v345_v12 = vadd.f32 %v781_v5, %v1067_v45  ;;  %752 = vst [vmem:[%s1136_s3 + $0x38] sm:$0xff] %v724_v7   ;;  %v784_v13 = vadd.f32 %v783_v10, %v782_v6  ;;  %v401_v14 = vadd.f32 %v823_v8, %v1067_v45 }
 0x102   :  { %v826_v15 = vadd.f32 %v825_v11, %v824_v9 }
 0x103   :  { %v348_v16 = vadd.f32 %v784_v13, %v1067_v45  ;;  %v454_v17 = vmax.f32 %v401_v14, 0.0  ;;  %v440_v19 = vmax.f32 %v345_v12, 0.0 }
 0x104   :  { %v404_v18 = vadd.f32 %v826_v15, %v1067_v45 }
 0x105   :  { %v441_v20 = vmax.f32 %v348_v16, 0.0  ;;  %v785_v21 = vpop.f32.mrb[8].mxu0  ;;  %v827_v23 = vpop.f32.mrb[8].mxu1 }
 0x106   :  { %v455_v22 = vmax.f32 %v404_v18, 0.0  ;;  %v786_v24 = vpop.f32.mrb[9].mxu0  ;;  %v828_v25 = vpop.f32.mrb[9].mxu1 }
 0x107   :  { %v694_v26 = vpack.c.bf16 %v441_v20, %v440_v19  ;;  %v787_v27 = vadd.f32 %v786_v24, %v785_v21  ;;  %v788_v28 = vpop.f32.mrb[10].mxu0  ;;  %v829_v30 = vadd.f32 %v828_v25, %v827_v23  ;;  %v830_v31 = vpop.f32.mrb[10].mxu1 }
 0x108   :  { %v729_v29 = vpack.c.bf16 %v455_v22, %v454_v17  ;;  %v789_v32 = vpop.f32.mrb[11].mxu0  ;;  %v831_v33 = vpop.f32.mrb[11].mxu1 }
 0x109   :  { %746 = vst [vmem:[%s1136_s3 + $0x8] sm:$0xff] %v694_v26   ;;  %v353_v34 = vadd.f32 %v787_v27, %v1067_v45  ;;  %v790_v35 = vadd.f32 %v789_v32, %v788_v28  ;;  %v409_v36 = vadd.f32 %v829_v30, %v1067_v45  ;;  %v832_v37 = vadd.f32 %v831_v33, %v830_v31 }
 0x10a   :  { %753 = vst [vmem:[%s1136_s3 + $0x40] sm:$0xff] %v729_v29  }
 0x10b   :  { %v356_v38 = vadd.f32 %v790_v35, %v1067_v45  ;;  %v456_v39 = vmax.f32 %v409_v36, 0.0  ;;  %v412_v40 = vadd.f32 %v832_v37, %v1067_v45  ;;  %v442_v41 = vmax.f32 %v353_v34, 0.0 }
 0x10d   :  { %v443_v42 = vmax.f32 %v356_v38, 0.0  ;;  %v791_v43 = vpop.f32.mrb[12].mxu0  ;;  %v457_v44 = vmax.f32 %v412_v40, 0.0  ;;  %v833_v46 = vpop.f32.mrb[12].mxu1 }
 0x10e   :  { %v792_v47 = vpop.f32.mrb[13].mxu0  ;;  %v834_v48 = vpop.f32.mrb[13].mxu1 }
 0x10f   :  { %v699_v49 = vpack.c.bf16 %v443_v42, %v442_v41  ;;  %v793_v50 = vadd.f32 %v792_v47, %v791_v43  ;;  %v794_v51 = vpop.f32.mrb[14].mxu0  ;;  %v734_v52 = vpack.c.bf16 %v457_v44, %v456_v39  ;;  %v835_v53 = vadd.f32 %v834_v48, %v833_v46  ;;  %v836_v54 = vpop.f32.mrb[14].mxu1 }
 0x110   :  { %v795_v55 = vpop.f32.mrb[15].mxu0  ;;  %v837_v56 = vpop.f32.mrb[15].mxu1 }
 0x111   :  { %747 = vst [vmem:[%s1136_s3 + $0x10] sm:$0xff] %v699_v49   ;;  %v361_v57 = vadd.f32 %v793_v50, %v1067_v45  ;;  %754 = vst [vmem:[%s1136_s3 + $0x48] sm:$0xff] %v734_v52   ;;  %v796_v58 = vadd.f32 %v795_v55, %v794_v51  ;;  %v417_v59 = vadd.f32 %v835_v53, %v1067_v45 }
 0x112   :  { %v838_v60 = vadd.f32 %v837_v56, %v836_v54 }
 0x113   :  { %v364_v61 = vadd.f32 %v796_v58, %v1067_v45  ;;  %v458_v62 = vmax.f32 %v417_v59, 0.0  ;;  %v444_v0 = vmax.f32 %v361_v57, 0.0 }
 0x114   :  { %v420_v63 = vadd.f32 %v838_v60, %v1067_v45 }
 0x115   :  { %v445_v1 = vmax.f32 %v364_v61, 0.0  ;;  %v797_v2 = vpop.f32.mrb[16].mxu0  ;;  %v839_v4 = vpop.f32.mrb[16].mxu1 }
 0x116   :  { %v459_v3 = vmax.f32 %v420_v63, 0.0  ;;  %v798_v5 = vpop.f32.mrb[17].mxu0  ;;  %v840_v6 = vpop.f32.mrb[17].mxu1 }
 0x117   :  { %v704_v7 = vpack.c.bf16 %v445_v1, %v444_v0  ;;  %v799_v8 = vadd.f32 %v798_v5, %v797_v2  ;;  %v800_v9 = vpop.f32.mrb[18].mxu0  ;;  %v841_v11 = vadd.f32 %v840_v6, %v839_v4  ;;  %v842_v12 = vpop.f32.mrb[18].mxu1 }
 0x118   :  { %v739_v10 = vpack.c.bf16 %v459_v3, %v458_v62  ;;  %v801_v13 = vpop.f32.mrb[19].mxu0  ;;  %v843_v14 = vpop.f32.mrb[19].mxu1 }
 0x119   :  { %748 = vst [vmem:[%s1136_s3 + $0x18] sm:$0xff] %v704_v7   ;;  %v369_v15 = vadd.f32 %v799_v8, %v1067_v45  ;;  %v802_v16 = vadd.f32 %v801_v13, %v800_v9  ;;  %v425_v17 = vadd.f32 %v841_v11, %v1067_v45  ;;  %v844_v18 = vadd.f32 %v843_v14, %v842_v12 }
 0x11a   :  { %755 = vst [vmem:[%s1136_s3 + $0x50] sm:$0xff] %v739_v10  }
 0x11b   :  { %v372_v19 = vadd.f32 %v802_v16, %v1067_v45  ;;  %v460_v20 = vmax.f32 %v425_v17, 0.0  ;;  %v428_v21 = vadd.f32 %v844_v18, %v1067_v45  ;;  %v446_v22 = vmax.f32 %v369_v15, 0.0 }
 0x11d   :  { %v447_v23 = vmax.f32 %v372_v19, 0.0  ;;  %v803_v24 = vpop.f32.mrb[20].mxu0  ;;  %v461_v25 = vmax.f32 %v428_v21, 0.0  ;;  %v845_v26 = vpop.f32.mrb[20].mxu1 }
 0x11e   :  { %v804_v27 = vpop.f32.mrb[21].mxu0  ;;  %v846_v28 = vpop.f32.mrb[21].mxu1 }
 0x11f   :  { %v709_v29 = vpack.c.bf16 %v447_v23, %v446_v22  ;;  %v805_v30 = vadd.f32 %v804_v27, %v803_v24  ;;  %v806_v31 = vpop.f32.mrb[22].mxu0  ;;  %v744_v32 = vpack.c.bf16 %v461_v25, %v460_v20  ;;  %v847_v33 = vadd.f32 %v846_v28, %v845_v26  ;;  %v848_v34 = vpop.f32.mrb[22].mxu1 }
 0x120   :  { %v807_v35 = vpop.f32.mrb[23].mxu0  ;;  %v849_v36 = vpop.f32.mrb[23].mxu1 }
 0x121   :  { %749 = vst [vmem:[%s1136_s3 + $0x20] sm:$0xff] %v709_v29   ;;  %v377_v37 = vadd.f32 %v805_v30, %v1067_v45  ;;  %756 = vst [vmem:[%s1136_s3 + $0x58] sm:$0xff] %v744_v32   ;;  %v808_v38 = vadd.f32 %v807_v35, %v806_v31  ;;  %v433_v39 = vadd.f32 %v847_v33, %v1067_v45 }
 0x123   :  { %v380_v40 = vadd.f32 %v808_v38, %v1067_v45  ;;  %v462_v41 = vmax.f32 %v433_v39, 0.0  ;;  %v448_v42 = vmax.f32 %v377_v37, 0.0 }
 0x125   :  { %v449_v43 = vmax.f32 %v380_v40, 0.0  ;;  %v809_v44 = vpop.f32.mrb[24].mxu0  ;;  %v685_v46 = vpack.c.bf16 %v462_v41, %v462_v41 }
 0x126   :  { %v810_v47 = vpop.f32.mrb[25].mxu0 }
 0x127   :  { %v714_v48 = vpack.c.bf16 %v449_v43, %v448_v42  ;;  %588 = vst [vmem:[%s1136_s3 + $0x60] sm:$0xf] %v685_v46  ;;  %v811_v49 = vadd.f32 %v810_v47, %v809_v44  ;;  %v812_v50 = vpop.f32.mrb[26].mxu0 }
 0x128   :  { %v813_v51 = vpop.f32.mrb[27].mxu0 }
 0x129   :  { %750 = vst [vmem:[%s1136_s3 + $0x28] sm:$0xff] %v714_v48   ;;  %v385_v52 = vadd.f32 %v811_v49, %v1067_v45  ;;  %v814_v53 = vadd.f32 %v813_v51, %v812_v50 }
 0x12b   :  { %v388_v54 = vadd.f32 %v814_v53, %v1067_v45  ;;  %v450_v55 = vmax.f32 %v385_v52, 0.0 }
 0x12d   :  { %v451_v56 = vmax.f32 %v388_v54, 0.0 }
 0x12f   :  { %v719_v57 = vpack.c.bf16 %v451_v56, %v450_v55 }
 0x131   :  { %751 = vst [vmem:[%s1136_s3 + $0x30] sm:$0xff] %v719_v57  }

// kernel: net_forward.13
= control target key start
LH: loop header
LB: loop body
LE: loop exit
PB: predicated region body
PF: predicated region fallthrough
CT: control target
= control target key end

     0   :  { %s51_s0 = inlined_call_operand.vmem [shape: bf16[2,2,8,128], index: 0, kind: input, shape index: {}]   ;;  %s52_s1 = inlined_call_operand.vmem [shape: bf16[8,128], index: 1, kind: output, shape index: {}]  }
   0x1   :  { %v8_v0 = vld [vmem:[%s51_s0] sm:$0xf]  ;;  %v23_v1 = vld [vmem:[%s51_s0 + $0x4] sm:$0xf]  ;;  %v24_v2 = vld [vmem:[%s51_s0 + $0x8] sm:$0xf] }
   0x2   :  { %v25_v3 = vld [vmem:[%s51_s0 + $0xc] sm:$0xf]  ;;  %v15_v4 = vmax.bf16 %v23_v1, %v8_v0 }
   0x3   :  { %v16_v5 = vmax.bf16 %v25_v3, %v24_v2 }
   0x5   :  { %v17_v6 = vmax.bf16 %v16_v5, %v15_v4 }
   0x7   :  { %18 = vst [vmem:[%s52_s1] sm:$0xf] %v17_v6 }

// kernel: net_forward.12
= control target key start
LH: loop header
LB: loop body
LE: loop exit
PB: predicated region body
PF: predicated region fallthrough
CT: control target
= control target key end

     0   :  { %s308_s1 = inlined_call_operand.vmem [shape: bf16[128,128], index: 1, kind: input, shape index: {}]   ;;  %s309_s0 = inlined_call_operand.vmem [shape: bf16[32,128], index: 0, kind: input, shape index: {}]   ;;  %s310_s2 = inlined_call_operand.vmem [shape: f32[1,128], index: 2, kind: input, shape index: {}]   ;;  %s311_s3 = inlined_call_operand.vmem [shape: bf16[32,128], index: 3, kind: output, shape index: {}]  }
   0x1   :  { %v239_v0 = vld [vmem:[%s308_s1] sm:$0xff]   ;;  %v240_v1 = vld [vmem:[%s308_s1 + $0x8] sm:$0xff]   ;;  %v241_v2 = vld [vmem:[%s308_s1 + $0x10] sm:$0xff]  }
   0x2   :  { %219 = vmatprep.subr.bf16.mxu0 %v239_v0  ;;  %v242_v3 = vld [vmem:[%s308_s1 + $0x18] sm:$0xff]   ;;  %v247_v4 = vld [vmem:[%s309_s0] sm:$0xff]   ;;  %v244_v6 = vld [vmem:[%s308_s1 + $0x28] sm:$0xff]  }
   0x3   :  { %220 = vmatpush3.bf16.msra.mxu0 %v239_v0  ;;  %235 = vmatprep.mubr.bf16.mxu0 %v247_v4  ;;  %v243_v5 = vld [vmem:[%s308_s1 + $0x20] sm:$0xff]   ;;  %v245_v7 = vld [vmem:[%s308_s1 + $0x30] sm:$0xff]   ;;  %v246_v8 = vld [vmem:[%s308_s1 + $0x38] sm:$0xff]  }
   0x4   :  { %221 = vmatprep.subr.bf16.mxu0 %v240_v1  ;;  %v248_v9 = vld [vmem:[%s309_s0 + $0x8] sm:$0xff]   ;;  %v179_v10 = vld [vmem:[%s310_s2] ss:$0 sm:$0xff] }
   0x7   :  { %222 = vmatpush3.bf16.msra.mxu0 %v240_v1 }
   0x8   :  { %223 = vmatprep.subr.bf16.mxu0 %v241_v2 }
   0xb   :  { %224 = vmatpush3.bf16.msra.mxu0 %v241_v2 }
   0xc   :  { %225 = vmatprep.subr.bf16.mxu0 %v242_v3 }
   0xf   :  { %226 = vmatpush3.bf16.msra.mxu0 %v242_v3 }
  0x10   :  { %227 = vmatprep.subr.bf16.mxu0 %v243_v5 }
  0x13   :  { %228 = vmatpush3.bf16.msra.mxu0 %v243_v5 }
  0x14   :  { %229 = vmatprep.subr.bf16.mxu0 %v244_v6 }
  0x17   :  { %230 = vmatpush3.bf16.msra.mxu0 %v244_v6 }
  0x18   :  { %231 = vmatprep.subr.bf16.mxu0 %v245_v7 }
  0x1b   :  { %232 = vmatpush3.bf16.msra.mxu0 %v245_v7 }
  0x1c   :  { %233 = vmatprep.subr.bf16.mxu0 %v246_v8 }
  0x1f   :  { %234 = vmatpush3.bf16.msra.mxu0 %v246_v8 }
  0x22   :  { %236 = vmatmul.mubr.bf16.vlgmr.msra.gmra.mrb[0].mxu0 %v248_v9 }
  0xf5   :  { %v237_v11 = vpop.f32.mrb[0].mxu0 }
  0xf6   :  { %v145_v12 = vadd.f32 %v237_v11, %v179_v10  ;;  %v136_v13 = vpop.f32.mrb[1].mxu0 }
  0xf7   :  { %v137_v14 = vadd.f32 %v179_v10, %v136_v13  ;;  %v238_v15 = vpop.f32.mrb[2].mxu0 }
  0xf8   :  { %v148_v16 = vadd.f32 %v238_v15, %v179_v10  ;;  %v139_v17 = vpop.f32.mrb[3].mxu0  ;;  %v153_v19 = vmax.f32 %v145_v12, 0.0 }
  0xf9   :  { %v140_v18 = vadd.f32 %v179_v10, %v139_v17  ;;  %v151_v21 = vmax.f32 %v137_v14, 0.0 }
  0xfa   :  { %v154_v20 = vmax.f32 %v148_v16, 0.0 }
  0xfb   :  { %v152_v22 = vmax.f32 %v140_v18, 0.0 }
  0xfc   :  { %v206_v23 = vpack.c.bf16 %v154_v20, %v153_v19 }
  0xfd   :  { %v201_v24 = vpack.c.bf16 %v152_v22, %v151_v21 }
  0xfe   :  { %208 = vst [vmem:[%s311_s3 + $0x8] sm:$0xff] %v206_v23  }
  0xff   :  { %202 = vst [vmem:[%s311_s3] sm:$0xff] %v201_v24  }

// kernel: net_forward.14
= control target key start
LH: loop header
LB: loop body
LE: loop exit
PB: predicated region body
PF: predicated region fallthrough
CT: control target
= control target key end

     0   :  { %v182_v0 = vmov 0.0   ;;  %vm183_vm0 = vmmov 0   ;;  %s237_s1 = inlined_call_operand.vmem [shape: bf16[128,128], index: 1, kind: input, shape index: {}]   ;;  %s238_s0 = inlined_call_operand.vmem [shape: bf16[8,128], index: 0, kind: input, shape index: {}]   ;;  %s239_s2 = inlined_call_operand.vmem [shape: f32[1,128], index: 2, kind: input, shape index: {}]   ;;  %s240_s3 = inlined_call_operand.vmem [shape: bf16[8,128], index: 3, kind: output, shape index: {}]  }
   0x1   :  { %152 = vmatprep.subr.bf16.mxu0 %v182_v0  ;;  %v174_v1 = vld [vmem:[%s237_s1] sm:$0xff]   ;;  %168 = vmatprep.mubr.msk.bf16.mxu0 %vm183_vm0, %v182_v0  ;;  %v175_v2 = vld [vmem:[%s237_s1 + $0x8] sm:$0xff]   ;;  %v176_v3 = vld [vmem:[%s237_s1 + $0x10] sm:$0xff]  }
   0x2   :  { %153 = vmatpush3.bf16.msra.mxu0 %v174_v1  ;;  %v177_v4 = vld [vmem:[%s237_s1 + $0x18] sm:$0xff]   ;;  %v178_v5 = vld [vmem:[%s237_s1 + $0x20] sm:$0xff]   ;;  %v179_v6 = vld [vmem:[%s237_s1 + $0x28] sm:$0xff]  }
   0x3   :  { %154 = vmatprep.subr.bf16.mxu0 %v182_v0  ;;  %v180_v7 = vld [vmem:[%s237_s1 + $0x30] sm:$0xff]   ;;  %v181_v8 = vld [vmem:[%s237_s1 + $0x38] sm:$0xff]   ;;  %v15_v9 = vld [vmem:[%s238_s0] sm:$0xf] }
   0x4   :  { %v134_v10 = vld [vmem:[%s239_s2] ss:$0 sm:$0xff] }
   0x6   :  { %155 = vmatpush3.bf16.msra.mxu0 %v175_v2 }
   0x7   :  { %156 = vmatprep.subr.bf16.mxu0 %v182_v0 }
   0xa   :  { %157 = vmatpush3.bf16.msra.mxu0 %v176_v3 }
   0xb   :  { %158 = vmatprep.subr.bf16.mxu0 %v182_v0 }
   0xe   :  { %159 = vmatpush3.bf16.msra.mxu0 %v177_v4 }
   0xf   :  { %160 = vmatprep.subr.bf16.mxu0 %v182_v0 }
  0x12   :  { %161 = vmatpush3.bf16.msra.mxu0 %v178_v5 }
  0x13   :  { %162 = vmatprep.subr.bf16.mxu0 %v182_v0 }
  0x16   :  { %163 = vmatpush3.bf16.msra.mxu0 %v179_v6 }
  0x17   :  { %164 = vmatprep.subr.bf16.mxu0 %v182_v0 }
  0x1a   :  { %165 = vmatpush3.bf16.msra.mxu0 %v180_v7 }
  0x1b   :  { %166 = vmatprep.subr.bf16.mxu0 %v182_v0 }
  0x1e   :  { %167 = vmatpush3.bf16.msra.mxu0 %v181_v8 }
  0x21   :  { %169 = vmatmul.mubr.bf16.vlgmr.msra.gmra.mrb[0].mxu0 %v15_v9 }
  0xf4   :  { %v121_v11 = vpop.f32.mrb[0].mxu0 }
  0xf5   :  { %v122_v12 = vadd.f32 %v134_v10, %v121_v11  ;;  %v170_v13 = vpop.f32.mrb[1].mxu0 }
  0xf6   :  { %v124_v14 = vpop.f32.mrb[2].mxu0 }
  0xf7   :  { %v127_v15 = vmax.f32 %v122_v12, 0.0  ;;  %v171_v16 = vpop.f32.mrb[3].mxu0 }
  0xf9   :  { %v128_v17 = vpack.c.bf16 %v127_v15, %v127_v15 }
  0xfb   :  { %129 = vst [vmem:[%s240_s3] sm:$0xf] %v128_v17 }

// kernel: net_forward.15
= control target key start
LH: loop header
LB: loop body
LE: loop exit
PB: predicated region body
PF: predicated region fallthrough
CT: control target
= control target key end

     0   :  { %v200_v0 = vmov 0.0   ;;  %vm201_vm0 = vmmov 0   ;;  %v127_v10 = vlaneseq  ;;  %s255_s1 = inlined_call_operand.vmem [shape: bf16[128,128], index: 1, kind: input, shape index: {}]   ;;  %s256_s0 = inlined_call_operand.vmem [shape: bf16[8,128], index: 0, kind: input, shape index: {}]   ;;  %s257_s2 = inlined_call_operand.vmem [shape: f32[1,128], index: 2, kind: input, shape index: {}]   ;;  %s258_s3 = inlined_call_operand.vmem [shape: f32[8,128], index: 3, kind: output, shape index: {}]  }
   0x1   :  { %166 = vmatprep.subr.bf16.mxu0 %v200_v0  ;;  %v188_v1 = vld [vmem:[%s255_s1] sm:$0xff]   ;;  %182 = vmatprep.mubr.msk.bf16.mxu0 %vm201_vm0, %v200_v0  ;;  %v189_v2 = vld [vmem:[%s255_s1 + $0x8] sm:$0xff]   ;;  %v190_v3 = vld [vmem:[%s255_s1 + $0x10] sm:$0xff]  }
   0x2   :  { %167 = vmatpush3.bf16.msra.mxu0 %v188_v1  ;;  %v191_v4 = vld [vmem:[%s255_s1 + $0x18] sm:$0xff]   ;;  %v192_v5 = vld [vmem:[%s255_s1 + $0x20] sm:$0xff]   ;;  %v193_v6 = vld [vmem:[%s255_s1 + $0x28] sm:$0xff]   ;;  %v128_v11 = vand.u32 127, %v127_v10 }
   0x3   :  { %168 = vmatprep.subr.bf16.mxu0 %v200_v0  ;;  %v194_v7 = vld [vmem:[%s255_s1 + $0x30] sm:$0xff]   ;;  %v195_v8 = vld [vmem:[%s255_s1 + $0x38] sm:$0xff]   ;;  %v15_v9 = vld [vmem:[%s256_s0] sm:$0xf] }
   0x4   :  { %v148_v12 = vld [vmem:[%s257_s2] ss:$0 sm:$0xff]  ;;  %vm129_vm1 = vcmp.lt.s32.totalorder %v128_v11, 10 }
   0x6   :  { %169 = vmatpush3.bf16.msra.mxu0 %v189_v2 }
   0x7   :  { %170 = vmatprep.subr.bf16.mxu0 %v200_v0 }
   0xa   :  { %171 = vmatpush3.bf16.msra.mxu0 %v190_v3 }
   0xb   :  { %172 = vmatprep.subr.bf16.mxu0 %v200_v0 }
   0xe   :  { %173 = vmatpush3.bf16.msra.mxu0 %v191_v4 }
   0xf   :  { %174 = vmatprep.subr.bf16.mxu0 %v200_v0 }
  0x12   :  { %175 = vmatpush3.bf16.msra.mxu0 %v192_v5 }
  0x13   :  { %176 = vmatprep.subr.bf16.mxu0 %v200_v0 }
  0x16   :  { %177 = vmatpush3.bf16.msra.mxu0 %v193_v6 }
  0x17   :  { %178 = vmatprep.subr.bf16.mxu0 %v200_v0 }
  0x1a   :  { %179 = vmatpush3.bf16.msra.mxu0 %v194_v7 }
  0x1b   :  { %180 = vmatprep.subr.bf16.mxu0 %v200_v0 }
  0x1e   :  { %181 = vmatpush3.bf16.msra.mxu0 %v195_v8 }
  0x21   :  { %183 = vmatmul.mubr.bf16.vlgmr.msra.gmra.mrb[0].mxu0 %v15_v9 }
  0xf4   :  { %v121_v13 = vpop.f32.mrb[0].mxu0 }
  0xf5   :  { %v122_v14 = vadd.f32 %v148_v12, %v121_v13  ;;  %v184_v15 = vpop.f32.mrb[1].mxu0 }
  0xf6   :  { %v124_v16 = vpop.f32.mrb[2].mxu0 }
  0xf7   :  { %v185_v17 = vpop.f32.mrb[3].mxu0  ;;  %v130_v18 = vsel %vm129_vm1, %v122_v14, -1e+30 }
  0xf8   :  { %131 = vmax.xlane.f32.xlu0 %v130_v18 }
 0x185   :  { %v132_v19 = vpop.xlane.xlu0 %131 }
 0x186   :  { %v133_v20 = vsub.f32 %v122_v14, %v132_v19 }
 0x188   :  { %v134_v21 = vmul.f32 1.442695, %v133_v20 }
 0x18a   :  { %196 = vpow2.f32 %v134_v21 }
 0x194   :  { %v197_v22 = vpop.eup %196 }
 0x195   :  { %v136_v23 = vsel %vm129_vm1, %v197_v22, 0.0 }
 0x196   :  { %137 = vadd.xlane.f32.xlu0 %v136_v23 }
 0x223   :  { %v138_v24 = vpop.xlane.xlu0 %137 }
 0x224   :  { %198 = vlog2.f32 %v138_v24 }
 0x22e   :  { %v199_v25 = vpop.eup %198 }
 0x22f   :  { %v140_v26 = vmul.f32 0.6931472, %v199_v25 }
 0x231   :  { %v141_v27 = vadd.f32 %v140_v26, %v132_v19 }
 0x233   :  { %v142_v28 = vsub.f32 %v122_v14, %v141_v27 }
 0x235   :  { %143 = vst [vmem:[%s258_s3] sm:$0xff] %v142_v28 }

</bundles_post_ra>
